<compile_context>
chip_gen: v7x
topology: tpu7x:2x2x1
jax: 0.10.0
libtpu: 0.0.40
codegen_flags: <defaults>
</compile_context>

<pallas_src>
import functools

import numpy as np
import jax
import jax.numpy as jnp
from jax.experimental import pallas as pl
from jax.experimental.pallas import tpu as pltpu


# ----------------------------------------------------------------------------- kernel helpers

def _shifted(a, shift, lane_iota, L):
    """shifted[:, l] = a[:, l - shift], zero where (l - shift) is outside [0, L)."""
    if shift == 0:
        return a
    rolled = pltpu.roll(a, shift % L, axis=1)                     # jnp.roll semantics
    mask = (lane_iota >= shift) & (lane_iota < L + shift)
    return jnp.where(mask, rolled, 0.0)


def _dilated_conv(a, w_flat, b, k, d, lane_iota):
    """'same'-padded dilated Conv1d in (C, L) layout.

    Folds the k taps into a single (Cout, k*Cin) @ (k*Cin, L) MXU matmul.
    w_flat[:, t*Cin:(t+1)*Cin] is the weight of tap t.
    """
    C, L = a.shape
    pad = d * (k - 1) // 2                                        # odd k -> symmetric pad
    pieces = [_shifted(a, pad - t * d, lane_iota, L) for t in range(k)]
    stacked = jnp.concatenate(pieces, axis=0) if k > 1 else pieces[0]   # (k*C, L), tile-aligned
    return jnp.dot(w_flat, stacked, preferred_element_type=jnp.float32) + b


# ----------------------------------------------------------------------------- fused kernel

def _spliceai_kernel(*refs, ks, ds, n_skip, crop):
    n_blocks = len(ks)
    it = iter(refs)
    x_ref = next(it)
    conv_w = next(it); conv_b = next(it)
    skip_w = next(it); skip_b = next(it)
    blocks = [tuple(next(it) for _ in range(8)) for _ in range(n_blocks)]
    conns = [(next(it), next(it)) for _ in range(n_skip)]
    out_w = next(it); out_b = next(it)
    pred_ref = next(it); feat_ref = next(it)

    x = x_ref[0].astype(jnp.float32)                              # (Cin_pad, L)
    L = x.shape[1]
    C = conv_w.shape[0]
    lane = jax.lax.broadcasted_iota(jnp.int32, (C, L), 1)         # hoisted lane index

    # stem 1x1 conv and skip 1x1 conv: (Cout, Cin) @ (Cin, L)
    conv = jnp.dot(conv_w[...], x, preferred_element_type=jnp.float32) + conv_b[...]
    skip = jnp.dot(skip_w[...], conv, preferred_element_type=jnp.float32) + skip_b[...]

    conn_i = 0
    for i in range(n_blocks):
        s1, h1, w1, b1, s2, h2, w2, b2 = blocks[i]
        k, d = ks[i], ds[i]
        # BN (eval) -> ReLU -> dilated conv, twice; then the residual add.
        a1 = jnp.maximum(conv * s1[...] + h1[...], 0.0)
        y1 = _dilated_conv(a1, w1[...], b1[...], k, d, lane)
        a2 = jnp.maximum(y1 * s2[...] + h2[...], 0.0)
        y2 = _dilated_conv(a2, w2[...], b2[...], k, d, lane)
        conv = conv + y2
        if (i + 1) % 4 == 0 or (i + 1) == n_blocks:
            dw, db = conns[conn_i]
            conn_i += 1
            skip = skip + jnp.dot(dw[...], conv, preferred_element_type=jnp.float32) + db[...]

    # crop the context halo: feat[:, l] = skip[:, l + crop]  (roll + lane-prefix slice)
    L_out = L - 2 * crop
    if crop > 0:
        feat = pltpu.roll(skip, (L - crop) % L, axis=1)[:, :L_out]
    else:
        feat = skip
    feat_ref[0] = feat.astype(feat_ref.dtype)

    # final 1x1 conv to 3 channels + softmax over the channel (sublane) axis
    logits = jnp.dot(out_w[...], feat, preferred_element_type=jnp.float32) + out_b[...]  # (3, L_out)
    m = jnp.max(logits, axis=0, keepdims=True)
    e = jnp.exp(logits - m)
    pred_ref[0] = (e / jnp.sum(e, axis=0, keepdims=True)).astype(pred_ref.dtype)


# ----------------------------------------------------------------------------- wrapper

def _const_spec(shape):
    zeros = (0,) * len(shape)
    return pl.BlockSpec(shape, lambda b: zeros)


def spliceai_forward(x_ncl, params, kernel_size, dilation_rate, save_feats=True):
    ks = [int(k) for k in kernel_size]
    ds = [int(d) for d in dilation_rate]
    assert all(k % 2 == 1 for k in ks), "padding='same' assumed symmetric (odd kernels)"
    n_blocks = len(ks)
    crop = int(np.sum(np.array(ds) * (np.array(ks) - 1)))         # context_length // 2

    B, c_in, L = x_ncl.shape
    conv_w, conv_b = params['conv']
    C = conv_w.shape[0]
    L_out = L - 2 * crop

    # pad the tiny input-channel dim (4 -> 8) so the stem matmul operands are sublane aligned
    c_pad = (-c_in) % 8
    x_in = jnp.pad(x_ncl, ((0, 0), (0, c_pad), (0, 0))) if c_pad else x_ncl
    conv_w_in = jnp.pad(conv_w, ((0, 0), (0, c_pad))) if c_pad else conv_w

    inputs = [x_in, conv_w_in, conv_b, params['skip'][0], params['skip'][1]]
    for i in range(n_blocks):
        s1, h1, w1, b1, s2, h2, w2, b2 = params['blocks'][i]
        k = ks[i]
        # (k, Cout, Cin) -> (Cout, k*Cin), taps contiguous along the contraction axis
        w1f = jnp.transpose(w1, (1, 0, 2)).reshape(C, k * C)
        w2f = jnp.transpose(w2, (1, 0, 2)).reshape(C, k * C)
        inputs += [s1, h1, w1f, b1, s2, h2, w2f, b2]
    for (dw, db) in params['skip_conns']:
        inputs += [dw, db]
    inputs += [params['out'][0], params['out'][1]]

    in_specs = [pl.BlockSpec((1, c_in + c_pad, L), lambda b: (b, 0, 0))]
    in_specs += [_const_spec(a.shape) for a in inputs[1:]]

    kern = functools.partial(_spliceai_kernel, ks=tuple(ks), ds=tuple(ds),
                             n_skip=len(params['skip_conns']), crop=crop)

    pred, feat = pl.pallas_call(
        kern,
        out_shape=(jax.ShapeDtypeStruct((B, 3, L_out), x_ncl.dtype),
                   jax.ShapeDtypeStruct((B, C, L_out), x_ncl.dtype)),
        grid=(B,),
        in_specs=in_specs,
        out_specs=(pl.BlockSpec((1, 3, L_out), lambda b: (b, 0, 0)),
                   pl.BlockSpec((1, C, L_out), lambda b: (b, 0, 0))),
        compiler_params=pltpu.CompilerParams(dimension_semantics=("parallel",)),
    )(*inputs)

    return (pred, feat, None) if save_feats else (pred, None, None)


# ----------------------------------------------------------------------------- params

def init_params(key, n_channels, kernel_size, dilation_rate):
    C = int(n_channels)
    ks = [int(k) for k in kernel_size]
    n_blocks = len(ks)

    def nxt():
        nonlocal key
        key, sub = jax.random.split(key)
        return sub

    def dense(cin, cout):
        w = 0.1 * jax.random.normal(nxt(), (cout, cin), jnp.float32)    # (Cout, Cin)
        b = 0.05 * jax.random.normal(nxt(), (cout, 1), jnp.float32)
        return w, b

    def bn():
        gamma = 1.0 + 0.1 * jax.random.normal(nxt(), (C, 1), jnp.float32)
        beta = 0.1 * jax.random.normal(nxt(), (C, 1), jnp.float32)
        mean = 0.1 * jax.random.normal(nxt(), (C, 1), jnp.float32)
        var = 1.0 + 0.1 * jnp.abs(jax.random.normal(nxt(), (C, 1), jnp.float32))
        scale = gamma / jnp.sqrt(var + 1e-5)
        shift = beta - mean * scale
        return scale, shift

    params = {'conv': dense(4, C), 'skip': dense(C, C), 'blocks': [], 'skip_conns': []}
    for i in range(n_blocks):
        k = ks[i]
        s1, h1 = bn()
        w1 = 0.05 * jax.random.normal(nxt(), (k, C, C), jnp.float32)    # (tap, Cout, Cin)
        b1 = 0.05 * jax.random.normal(nxt(), (C, 1), jnp.float32)
        s2, h2 = bn()
        w2 = 0.05 * jax.random.normal(nxt(), (k, C, C), jnp.float32)
        b2 = 0.05 * jax.random.normal(nxt(), (C, 1), jnp.float32)
        params['blocks'].append((s1, h1, w1, b1, s2, h2, w2, b2))
        if (i + 1) % 4 == 0 or (i + 1) == n_blocks:
            params['skip_conns'].append(dense(C, C))
    params['out'] = dense(C, 3)
    return params


# ----------------------------------------------------------------------------- reference (pure JAX)

def _ref_forward(x_ncl, params, kernel_size, dilation_rate):
    ks = [int(k) for k in kernel_size]
    ds = [int(d) for d in dilation_rate]
    n_blocks = len(ks)
    crop = int(np.sum(np.array(ds) * (np.array(ks) - 1)))
    hi = jax.lax.Precision.HIGHEST

    def pw(a, w, b):                                              # (B,Cin,L),(Cout,Cin),(Cout,1)
        return jnp.einsum('oc,bcl->bol', w, a, precision=hi) + b

    conv = pw(x_ncl, *params['conv'])
    skip = pw(conv, *params['skip'])
    conn_i = 0
    for i in range(n_blocks):
        s1, h1, w1, b1, s2, h2, w2, b2 = params['blocks'][i]
        k, d = ks[i], ds[i]
        pad = d * (k - 1) // 2
        L = conv.shape[2]

        def dilconv(a, w, b):
            ap = jnp.pad(a, ((0, 0), (0, 0), (pad, pad)))
            out = jnp.zeros((a.shape[0], w.shape[1], L), jnp.float32) + b
            for t in range(k):
                out = out + jnp.einsum('oc,bcl->bol', w[t],
                                       ap[:, :, t * d:t * d + L], precision=hi)
            return out

        a1 = jnp.maximum(conv * s1 + h1, 0.0)
        y1 = dilconv(a1, w1, b1)
        a2 = jnp.maximum(y1 * s2 + h2, 0.0)
        y2 = dilconv(a2, w2, b2)
        conv = conv + y2
        if (i + 1) % 4 == 0 or (i + 1) == n_blocks:
            skip = skip + pw(conv, *params['skip_conns'][conn_i])
            conn_i += 1
    L = skip.shape[2]
    feat = skip[:, :, crop:L - crop]
    pred = jax.nn.softmax(pw(feat, *params['out']), axis=1)
    return pred, feat


# ----------------------------------------------------------------------------- main

if __name__ == "__main__":
    n_channels = 32
    kernel_size = np.array([3, 3, 3, 3])
    dilation_rate = np.array([1, 1, 2, 4])
    B, L = 2, 128
    context_length = int(2 * np.sum(dilation_rate * (kernel_size - 1)))   # = 32

    key = jax.random.PRNGKey(0)
    key, xkey = jax.random.split(key)
    x = jax.random.normal(xkey, (B, 4, L), jnp.float32)                   # NCL, like PyTorch
    params = init_params(key, n_channels, kernel_size, dilation_rate)

    pred, feat, _ = spliceai_forward(x, params, kernel_size, dilation_rate, save_feats=True)
    pred = jax.block_until_ready(pred)
    feat = jax.block_until_ready(feat)

    assert pred.shape == (B, 3, L - context_length)
    assert feat.shape == (B, n_channels, L - context_length)

    pred_ref, feat_ref = _ref_forward(x, params, kernel_size, dilation_rate)
    np.testing.assert_allclose(np.asarray(pred), np.asarray(pred_ref), rtol=2e-2, atol=2e-3)
    np.testing.assert_allclose(np.asarray(feat), np.asarray(feat_ref), rtol=2e-2, atol=2e-3)
    np.testing.assert_allclose(np.asarray(pred).sum(axis=1), 1.0, rtol=1e-4, atol=1e-4)

    print("KERNEL_OK")
</pallas_src>

<mosaic_0001>
module attributes {stable_mosaic.version = 11 : i64} {
  func.func @_spliceai_kernel(%arg0: i32, %arg1: memref<1x8x128xf32, #tpu.memory_space<vmem>>, %arg2: memref<32x8xf32, #tpu.memory_space<vmem>>, %arg3: memref<32x1xf32, #tpu.memory_space<vmem>>, %arg4: memref<32x32xf32, #tpu.memory_space<vmem>>, %arg5: memref<32x1xf32, #tpu.memory_space<vmem>>, %arg6: memref<32x1xf32, #tpu.memory_space<vmem>>, %arg7: memref<32x1xf32, #tpu.memory_space<vmem>>, %arg8: memref<32x96xf32, #tpu.memory_space<vmem>>, %arg9: memref<32x1xf32, #tpu.memory_space<vmem>>, %arg10: memref<32x1xf32, #tpu.memory_space<vmem>>, %arg11: memref<32x1xf32, #tpu.memory_space<vmem>>, %arg12: memref<32x96xf32, #tpu.memory_space<vmem>>, %arg13: memref<32x1xf32, #tpu.memory_space<vmem>>, %arg14: memref<32x1xf32, #tpu.memory_space<vmem>>, %arg15: memref<32x1xf32, #tpu.memory_space<vmem>>, %arg16: memref<32x96xf32, #tpu.memory_space<vmem>>, %arg17: memref<32x1xf32, #tpu.memory_space<vmem>>, %arg18: memref<32x1xf32, #tpu.memory_space<vmem>>, %arg19: memref<32x1xf32, #tpu.memory_space<vmem>>, %arg20: memref<32x96xf32, #tpu.memory_space<vmem>>, %arg21: memref<32x1xf32, #tpu.memory_space<vmem>>, %arg22: memref<32x1xf32, #tpu.memory_space<vmem>>, %arg23: memref<32x1xf32, #tpu.memory_space<vmem>>, %arg24: memref<32x96xf32, #tpu.memory_space<vmem>>, %arg25: memref<32x1xf32, #tpu.memory_space<vmem>>, %arg26: memref<32x1xf32, #tpu.memory_space<vmem>>, %arg27: memref<32x1xf32, #tpu.memory_space<vmem>>, %arg28: memref<32x96xf32, #tpu.memory_space<vmem>>, %arg29: memref<32x1xf32, #tpu.memory_space<vmem>>, %arg30: memref<32x1xf32, #tpu.memory_space<vmem>>, %arg31: memref<32x1xf32, #tpu.memory_space<vmem>>, %arg32: memref<32x96xf32, #tpu.memory_space<vmem>>, %arg33: memref<32x1xf32, #tpu.memory_space<vmem>>, %arg34: memref<32x1xf32, #tpu.memory_space<vmem>>, %arg35: memref<32x1xf32, #tpu.memory_space<vmem>>, %arg36: memref<32x96xf32, #tpu.memory_space<vmem>>, %arg37: memref<32x1xf32, #tpu.memory_space<vmem>>, %arg38: memref<32x32xf32, #tpu.memory_space<vmem>>, %arg39: memref<32x1xf32, #tpu.memory_space<vmem>>, %arg40: memref<3x32xf32, #tpu.memory_space<vmem>>, %arg41: memref<3x1xf32, #tpu.memory_space<vmem>>, %arg42: memref<1x3x96xf32, #tpu.memory_space<vmem>>, %arg43: memref<1x32x96xf32, #tpu.memory_space<vmem>>) attributes {dimension_semantics = [#tpu.dimension_semantics<parallel>], iteration_bounds = array<i64: 2>, scalar_prefetch = 0 : i64, scratch_operands = 0 : i64, tpu.core_type = #tpu.core_type<tc>, window_params = [{transform_indices = @transform_0, window_bounds = array<i64: 1, 8, 128>}, {pipeline_mode = #tpu.pipeline_mode<synchronous>, transform_indices = @transform_1, window_bounds = array<i64: 32, 8>}, {pipeline_mode = #tpu.pipeline_mode<synchronous>, transform_indices = @transform_2, window_bounds = array<i64: 32, 1>}, {pipeline_mode = #tpu.pipeline_mode<synchronous>, transform_indices = @transform_3, window_bounds = array<i64: 32, 32>}, {pipeline_mode = #tpu.pipeline_mode<synchronous>, transform_indices = @transform_4, window_bounds = array<i64: 32, 1>}, {pipeline_mode = #tpu.pipeline_mode<synchronous>, transform_indices = @transform_5, window_bounds = array<i64: 32, 1>}, {pipeline_mode = #tpu.pipeline_mode<synchronous>, transform_indices = @transform_6, window_bounds = array<i64: 32, 1>}, {pipeline_mode = #tpu.pipeline_mode<synchronous>, transform_indices = @transform_7, window_bounds = array<i64: 32, 96>}, {pipeline_mode = #tpu.pipeline_mode<synchronous>, transform_indices = @transform_8, window_bounds = array<i64: 32, 1>}, {pipeline_mode = #tpu.pipeline_mode<synchronous>, transform_indices = @transform_9, window_bounds = array<i64: 32, 1>}, {pipeline_mode = #tpu.pipeline_mode<synchronous>, transform_indices = @transform_10, window_bounds = array<i64: 32, 1>}, {pipeline_mode = #tpu.pipeline_mode<synchronous>, transform_indices = @transform_11, window_bounds = array<i64: 32, 96>}, {pipeline_mode = #tpu.pipeline_mode<synchronous>, transform_indices = @transform_12, window_bounds = array<i64: 32, 1>}, {pipeline_mode = #tpu.pipeline_mode<synchronous>, transform_indices = @transform_13, window_bounds = array<i64: 32, 1>}, {pipeline_mode = #tpu.pipeline_mode<synchronous>, transform_indices = @transform_14, window_bounds = array<i64: 32, 1>}, {pipeline_mode = #tpu.pipeline_mode<synchronous>, transform_indices = @transform_15, window_bounds = array<i64: 32, 96>}, {pipeline_mode = #tpu.pipeline_mode<synchronous>, transform_indices = @transform_16, window_bounds = array<i64: 32, 1>}, {pipeline_mode = #tpu.pipeline_mode<synchronous>, transform_indices = @transform_17, window_bounds = array<i64: 32, 1>}, {pipeline_mode = #tpu.pipeline_mode<synchronous>, transform_indices = @transform_18, window_bounds = array<i64: 32, 1>}, {pipeline_mode = #tpu.pipeline_mode<synchronous>, transform_indices = @transform_19, window_bounds = array<i64: 32, 96>}, {pipeline_mode = #tpu.pipeline_mode<synchronous>, transform_indices = @transform_20, window_bounds = array<i64: 32, 1>}, {pipeline_mode = #tpu.pipeline_mode<synchronous>, transform_indices = @transform_21, window_bounds = array<i64: 32, 1>}, {pipeline_mode = #tpu.pipeline_mode<synchronous>, transform_indices = @transform_22, window_bounds = array<i64: 32, 1>}, {pipeline_mode = #tpu.pipeline_mode<synchronous>, transform_indices = @transform_23, window_bounds = array<i64: 32, 96>}, {pipeline_mode = #tpu.pipeline_mode<synchronous>, transform_indices = @transform_24, window_bounds = array<i64: 32, 1>}, {pipeline_mode = #tpu.pipeline_mode<synchronous>, transform_indices = @transform_25, window_bounds = array<i64: 32, 1>}, {pipeline_mode = #tpu.pipeline_mode<synchronous>, transform_indices = @transform_26, window_bounds = array<i64: 32, 1>}, {pipeline_mode = #tpu.pipeline_mode<synchronous>, transform_indices = @transform_27, window_bounds = array<i64: 32, 96>}, {pipeline_mode = #tpu.pipeline_mode<synchronous>, transform_indices = @transform_28, window_bounds = array<i64: 32, 1>}, {pipeline_mode = #tpu.pipeline_mode<synchronous>, transform_indices = @transform_29, window_bounds = array<i64: 32, 1>}, {pipeline_mode = #tpu.pipeline_mode<synchronous>, transform_indices = @transform_30, window_bounds = array<i64: 32, 1>}, {pipeline_mode = #tpu.pipeline_mode<synchronous>, transform_indices = @transform_31, window_bounds = array<i64: 32, 96>}, {pipeline_mode = #tpu.pipeline_mode<synchronous>, transform_indices = @transform_32, window_bounds = array<i64: 32, 1>}, {pipeline_mode = #tpu.pipeline_mode<synchronous>, transform_indices = @transform_33, window_bounds = array<i64: 32, 1>}, {pipeline_mode = #tpu.pipeline_mode<synchronous>, transform_indices = @transform_34, window_bounds = array<i64: 32, 1>}, {pipeline_mode = #tpu.pipeline_mode<synchronous>, transform_indices = @transform_35, window_bounds = array<i64: 32, 96>}, {pipeline_mode = #tpu.pipeline_mode<synchronous>, transform_indices = @transform_36, window_bounds = array<i64: 32, 1>}, {pipeline_mode = #tpu.pipeline_mode<synchronous>, transform_indices = @transform_37, window_bounds = array<i64: 32, 32>}, {pipeline_mode = #tpu.pipeline_mode<synchronous>, transform_indices = @transform_38, window_bounds = array<i64: 32, 1>}, {pipeline_mode = #tpu.pipeline_mode<synchronous>, transform_indices = @transform_39, window_bounds = array<i64: 3, 32>}, {pipeline_mode = #tpu.pipeline_mode<synchronous>, transform_indices = @transform_40, window_bounds = array<i64: 3, 1>}, {transform_indices = @transform_41, window_bounds = array<i64: 1, 3, 96>}, {transform_indices = @transform_42, window_bounds = array<i64: 1, 32, 96>}]} {
    %c0 = arith.constant 0 : index
    %c0_0 = arith.constant 0 : index
    %c0_1 = arith.constant 0 : index
    %0 = vector.load %arg1[%c0, %c0_0, %c0_1] : memref<1x8x128xf32, #tpu.memory_space<vmem>>, vector<1x8x128xf32>
    %1 = vector.shape_cast %0 : vector<1x8x128xf32> to vector<8x128xf32>
    %2 = tpu.iota {dimensions = array<i32: 1>} : vector<32x128xi32>
    %c0_2 = arith.constant 0 : index
    %c0_3 = arith.constant 0 : index
    %3 = vector.load %arg2[%c0_2, %c0_3] : memref<32x8xf32, #tpu.memory_space<vmem>>, vector<32x8xf32>
    %cst = arith.constant dense<0.000000e+00> : vector<32x128xf32>
    %4 = tpu.matmul %3, %1, %cst {dimension_numbers = #tpu.dot_dimension_numbers<[1], [0], [0], [1], [0, 0, 1, 1], [], []>} : vector<32x8xf32>, vector<8x128xf32>, vector<32x128xf32> -> vector<32x128xf32>
    %c0_4 = arith.constant 0 : index
    %c0_5 = arith.constant 0 : index
    %5 = vector.load %arg3[%c0_4, %c0_5] : memref<32x1xf32, #tpu.memory_space<vmem>>, vector<32x1xf32>
    %6 = vector.broadcast %5 : vector<32x1xf32> to vector<32x128xf32>
    %7 = arith.addf %4, %6 : vector<32x128xf32>
    %c0_6 = arith.constant 0 : index
    %c0_7 = arith.constant 0 : index
    %8 = vector.load %arg4[%c0_6, %c0_7] : memref<32x32xf32, #tpu.memory_space<vmem>>, vector<32x32xf32>
    %cst_8 = arith.constant dense<0.000000e+00> : vector<32x128xf32>
    %9 = tpu.matmul %8, %7, %cst_8 {dimension_numbers = #tpu.dot_dimension_numbers<[1], [0], [0], [1], [0, 0, 1, 1], [], []>} : vector<32x32xf32>, vector<32x128xf32>, vector<32x128xf32> -> vector<32x128xf32>
    %c0_9 = arith.constant 0 : index
    %c0_10 = arith.constant 0 : index
    %10 = vector.load %arg5[%c0_9, %c0_10] : memref<32x1xf32, #tpu.memory_space<vmem>>, vector<32x1xf32>
    %11 = vector.broadcast %10 : vector<32x1xf32> to vector<32x128xf32>
    %12 = arith.addf %9, %11 : vector<32x128xf32>
    %c0_11 = arith.constant 0 : index
    %c0_12 = arith.constant 0 : index
    %13 = vector.load %arg6[%c0_11, %c0_12] : memref<32x1xf32, #tpu.memory_space<vmem>>, vector<32x1xf32>
    %14 = vector.broadcast %13 : vector<32x1xf32> to vector<32x128xf32>
    %15 = arith.mulf %7, %14 : vector<32x128xf32>
    %c0_13 = arith.constant 0 : index
    %c0_14 = arith.constant 0 : index
    %16 = vector.load %arg7[%c0_13, %c0_14] : memref<32x1xf32, #tpu.memory_space<vmem>>, vector<32x1xf32>
    %17 = vector.broadcast %16 : vector<32x1xf32> to vector<32x128xf32>
    %18 = arith.addf %15, %17 : vector<32x128xf32>
    %cst_15 = arith.constant 0.000000e+00 : f32
    %19 = vector.broadcast %cst_15 : f32 to vector<32x128xf32>
    %20 = arith.maximumf %18, %19 : vector<32x128xf32>
    %c0_16 = arith.constant 0 : index
    %c0_17 = arith.constant 0 : index
    %21 = vector.load %arg8[%c0_16, %c0_17] : memref<32x96xf32, #tpu.memory_space<vmem>>, vector<32x96xf32>
    %c0_18 = arith.constant 0 : index
    %c0_19 = arith.constant 0 : index
    %22 = vector.load %arg9[%c0_18, %c0_19] : memref<32x1xf32, #tpu.memory_space<vmem>>, vector<32x1xf32>
    %c1_i32 = arith.constant 1 : i32
    %23 = tpu.dynamic_rotate %20 by %c1_i32 dim 1 : vector<32x128xf32>, i32 -> vector<32x128xf32>
    %c1_i32_20 = arith.constant 1 : i32
    %24 = vector.broadcast %c1_i32_20 : i32 to vector<32x128xi32>
    %25 = arith.cmpi sge, %2, %24 : vector<32x128xi32>
    %c129_i32 = arith.constant 129 : i32
    %26 = vector.broadcast %c129_i32 : i32 to vector<32x128xi32>
    %27 = arith.cmpi slt, %2, %26 : vector<32x128xi32>
    %28 = arith.andi %25, %27 : vector<32x128xi1>
    %cst_21 = arith.constant 0.000000e+00 : f32
    %29 = vector.broadcast %cst_21 : f32 to vector<32x128xf32>
    %30 = arith.select %28, %23, %29 : vector<32x128xi1>, vector<32x128xf32>
    %c127_i32 = arith.constant 127 : i32
    %31 = tpu.dynamic_rotate %20 by %c127_i32 dim 1 : vector<32x128xf32>, i32 -> vector<32x128xf32>
    %c-1_i32 = arith.constant -1 : i32
    %32 = vector.broadcast %c-1_i32 : i32 to vector<32x128xi32>
    %33 = arith.cmpi sge, %2, %32 : vector<32x128xi32>
    %c127_i32_22 = arith.constant 127 : i32
    %34 = vector.broadcast %c127_i32_22 : i32 to vector<32x128xi32>
    %35 = arith.cmpi slt, %2, %34 : vector<32x128xi32>
    %36 = arith.andi %33, %35 : vector<32x128xi1>
    %cst_23 = arith.constant 0.000000e+00 : f32
    %37 = vector.broadcast %cst_23 : f32 to vector<32x128xf32>
    %38 = arith.select %36, %31, %37 : vector<32x128xi1>, vector<32x128xf32>
    %39 = tpu.concatenate %30, %20, %38 in 0 : vector<32x128xf32>, vector<32x128xf32>, vector<32x128xf32> -> vector<96x128xf32>
    %cst_24 = arith.constant dense<0.000000e+00> : vector<32x128xf32>
    %40 = tpu.matmul %21, %39, %cst_24 {dimension_numbers = #tpu.dot_dimension_numbers<[1], [0], [0], [1], [0, 0, 1, 1], [], []>} : vector<32x96xf32>, vector<96x128xf32>, vector<32x128xf32> -> vector<32x128xf32>
    %41 = vector.broadcast %22 : vector<32x1xf32> to vector<32x128xf32>
    %42 = arith.addf %40, %41 : vector<32x128xf32>
    %c0_25 = arith.constant 0 : index
    %c0_26 = arith.constant 0 : index
    %43 = vector.load %arg10[%c0_25, %c0_26] : memref<32x1xf32, #tpu.memory_space<vmem>>, vector<32x1xf32>
    %44 = vector.broadcast %43 : vector<32x1xf32> to vector<32x128xf32>
    %45 = arith.mulf %42, %44 : vector<32x128xf32>
    %c0_27 = arith.constant 0 : index
    %c0_28 = arith.constant 0 : index
    %46 = vector.load %arg11[%c0_27, %c0_28] : memref<32x1xf32, #tpu.memory_space<vmem>>, vector<32x1xf32>
    %47 = vector.broadcast %46 : vector<32x1xf32> to vector<32x128xf32>
    %48 = arith.addf %45, %47 : vector<32x128xf32>
    %cst_29 = arith.constant 0.000000e+00 : f32
    %49 = vector.broadcast %cst_29 : f32 to vector<32x128xf32>
    %50 = arith.maximumf %48, %49 : vector<32x128xf32>
    %c0_30 = arith.constant 0 : index
    %c0_31 = arith.constant 0 : index
    %51 = vector.load %arg12[%c0_30, %c0_31] : memref<32x96xf32, #tpu.memory_space<vmem>>, vector<32x96xf32>
    %c0_32 = arith.constant 0 : index
    %c0_33 = arith.constant 0 : index
    %52 = vector.load %arg13[%c0_32, %c0_33] : memref<32x1xf32, #tpu.memory_space<vmem>>, vector<32x1xf32>
    %c1_i32_34 = arith.constant 1 : i32
    %53 = tpu.dynamic_rotate %50 by %c1_i32_34 dim 1 : vector<32x128xf32>, i32 -> vector<32x128xf32>
    %c1_i32_35 = arith.constant 1 : i32
    %54 = vector.broadcast %c1_i32_35 : i32 to vector<32x128xi32>
    %55 = arith.cmpi sge, %2, %54 : vector<32x128xi32>
    %c129_i32_36 = arith.constant 129 : i32
    %56 = vector.broadcast %c129_i32_36 : i32 to vector<32x128xi32>
    %57 = arith.cmpi slt, %2, %56 : vector<32x128xi32>
    %58 = arith.andi %55, %57 : vector<32x128xi1>
    %cst_37 = arith.constant 0.000000e+00 : f32
    %59 = vector.broadcast %cst_37 : f32 to vector<32x128xf32>
    %60 = arith.select %58, %53, %59 : vector<32x128xi1>, vector<32x128xf32>
    %c127_i32_38 = arith.constant 127 : i32
    %61 = tpu.dynamic_rotate %50 by %c127_i32_38 dim 1 : vector<32x128xf32>, i32 -> vector<32x128xf32>
    %c-1_i32_39 = arith.constant -1 : i32
    %62 = vector.broadcast %c-1_i32_39 : i32 to vector<32x128xi32>
    %63 = arith.cmpi sge, %2, %62 : vector<32x128xi32>
    %c127_i32_40 = arith.constant 127 : i32
    %64 = vector.broadcast %c127_i32_40 : i32 to vector<32x128xi32>
    %65 = arith.cmpi slt, %2, %64 : vector<32x128xi32>
    %66 = arith.andi %63, %65 : vector<32x128xi1>
    %cst_41 = arith.constant 0.000000e+00 : f32
    %67 = vector.broadcast %cst_41 : f32 to vector<32x128xf32>
    %68 = arith.select %66, %61, %67 : vector<32x128xi1>, vector<32x128xf32>
    %69 = tpu.concatenate %60, %50, %68 in 0 : vector<32x128xf32>, vector<32x128xf32>, vector<32x128xf32> -> vector<96x128xf32>
    %cst_42 = arith.constant dense<0.000000e+00> : vector<32x128xf32>
    %70 = tpu.matmul %51, %69, %cst_42 {dimension_numbers = #tpu.dot_dimension_numbers<[1], [0], [0], [1], [0, 0, 1, 1], [], []>} : vector<32x96xf32>, vector<96x128xf32>, vector<32x128xf32> -> vector<32x128xf32>
    %71 = vector.broadcast %52 : vector<32x1xf32> to vector<32x128xf32>
    %72 = arith.addf %70, %71 : vector<32x128xf32>
    %73 = arith.addf %7, %72 : vector<32x128xf32>
    %c0_43 = arith.constant 0 : index
    %c0_44 = arith.constant 0 : index
    %74 = vector.load %arg14[%c0_43, %c0_44] : memref<32x1xf32, #tpu.memory_space<vmem>>, vector<32x1xf32>
    %75 = vector.broadcast %74 : vector<32x1xf32> to vector<32x128xf32>
    %76 = arith.mulf %73, %75 : vector<32x128xf32>
    %c0_45 = arith.constant 0 : index
    %c0_46 = arith.constant 0 : index
    %77 = vector.load %arg15[%c0_45, %c0_46] : memref<32x1xf32, #tpu.memory_space<vmem>>, vector<32x1xf32>
    %78 = vector.broadcast %77 : vector<32x1xf32> to vector<32x128xf32>
    %79 = arith.addf %76, %78 : vector<32x128xf32>
    %cst_47 = arith.constant 0.000000e+00 : f32
    %80 = vector.broadcast %cst_47 : f32 to vector<32x128xf32>
    %81 = arith.maximumf %79, %80 : vector<32x128xf32>
    %c0_48 = arith.constant 0 : index
    %c0_49 = arith.constant 0 : index
    %82 = vector.load %arg16[%c0_48, %c0_49] : memref<32x96xf32, #tpu.memory_space<vmem>>, vector<32x96xf32>
    %c0_50 = arith.constant 0 : index
    %c0_51 = arith.constant 0 : index
    %83 = vector.load %arg17[%c0_50, %c0_51] : memref<32x1xf32, #tpu.memory_space<vmem>>, vector<32x1xf32>
    %c1_i32_52 = arith.constant 1 : i32
    %84 = tpu.dynamic_rotate %81 by %c1_i32_52 dim 1 : vector<32x128xf32>, i32 -> vector<32x128xf32>
    %c1_i32_53 = arith.constant 1 : i32
    %85 = vector.broadcast %c1_i32_53 : i32 to vector<32x128xi32>
    %86 = arith.cmpi sge, %2, %85 : vector<32x128xi32>
    %c129_i32_54 = arith.constant 129 : i32
    %87 = vector.broadcast %c129_i32_54 : i32 to vector<32x128xi32>
    %88 = arith.cmpi slt, %2, %87 : vector<32x128xi32>
    %89 = arith.andi %86, %88 : vector<32x128xi1>
    %cst_55 = arith.constant 0.000000e+00 : f32
    %90 = vector.broadcast %cst_55 : f32 to vector<32x128xf32>
    %91 = arith.select %89, %84, %90 : vector<32x128xi1>, vector<32x128xf32>
    %c127_i32_56 = arith.constant 127 : i32
    %92 = tpu.dynamic_rotate %81 by %c127_i32_56 dim 1 : vector<32x128xf32>, i32 -> vector<32x128xf32>
    %c-1_i32_57 = arith.constant -1 : i32
    %93 = vector.broadcast %c-1_i32_57 : i32 to vector<32x128xi32>
    %94 = arith.cmpi sge, %2, %93 : vector<32x128xi32>
    %c127_i32_58 = arith.constant 127 : i32
    %95 = vector.broadcast %c127_i32_58 : i32 to vector<32x128xi32>
    %96 = arith.cmpi slt, %2, %95 : vector<32x128xi32>
    %97 = arith.andi %94, %96 : vector<32x128xi1>
    %cst_59 = arith.constant 0.000000e+00 : f32
    %98 = vector.broadcast %cst_59 : f32 to vector<32x128xf32>
    %99 = arith.select %97, %92, %98 : vector<32x128xi1>, vector<32x128xf32>
    %100 = tpu.concatenate %91, %81, %99 in 0 : vector<32x128xf32>, vector<32x128xf32>, vector<32x128xf32> -> vector<96x128xf32>
    %cst_60 = arith.constant dense<0.000000e+00> : vector<32x128xf32>
    %101 = tpu.matmul %82, %100, %cst_60 {dimension_numbers = #tpu.dot_dimension_numbers<[1], [0], [0], [1], [0, 0, 1, 1], [], []>} : vector<32x96xf32>, vector<96x128xf32>, vector<32x128xf32> -> vector<32x128xf32>
    %102 = vector.broadcast %83 : vector<32x1xf32> to vector<32x128xf32>
    %103 = arith.addf %101, %102 : vector<32x128xf32>
    %c0_61 = arith.constant 0 : index
    %c0_62 = arith.constant 0 : index
    %104 = vector.load %arg18[%c0_61, %c0_62] : memref<32x1xf32, #tpu.memory_space<vmem>>, vector<32x1xf32>
    %105 = vector.broadcast %104 : vector<32x1xf32> to vector<32x128xf32>
    %106 = arith.mulf %103, %105 : vector<32x128xf32>
    %c0_63 = arith.constant 0 : index
    %c0_64 = arith.constant 0 : index
    %107 = vector.load %arg19[%c0_63, %c0_64] : memref<32x1xf32, #tpu.memory_space<vmem>>, vector<32x1xf32>
    %108 = vector.broadcast %107 : vector<32x1xf32> to vector<32x128xf32>
    %109 = arith.addf %106, %108 : vector<32x128xf32>
    %cst_65 = arith.constant 0.000000e+00 : f32
    %110 = vector.broadcast %cst_65 : f32 to vector<32x128xf32>
    %111 = arith.maximumf %109, %110 : vector<32x128xf32>
    %c0_66 = arith.constant 0 : index
    %c0_67 = arith.constant 0 : index
    %112 = vector.load %arg20[%c0_66, %c0_67] : memref<32x96xf32, #tpu.memory_space<vmem>>, vector<32x96xf32>
    %c0_68 = arith.constant 0 : index
    %c0_69 = arith.constant 0 : index
    %113 = vector.load %arg21[%c0_68, %c0_69] : memref<32x1xf32, #tpu.memory_space<vmem>>, vector<32x1xf32>
    %c1_i32_70 = arith.constant 1 : i32
    %114 = tpu.dynamic_rotate %111 by %c1_i32_70 dim 1 : vector<32x128xf32>, i32 -> vector<32x128xf32>
    %c1_i32_71 = arith.constant 1 : i32
    %115 = vector.broadcast %c1_i32_71 : i32 to vector<32x128xi32>
    %116 = arith.cmpi sge, %2, %115 : vector<32x128xi32>
    %c129_i32_72 = arith.constant 129 : i32
    %117 = vector.broadcast %c129_i32_72 : i32 to vector<32x128xi32>
    %118 = arith.cmpi slt, %2, %117 : vector<32x128xi32>
    %119 = arith.andi %116, %118 : vector<32x128xi1>
    %cst_73 = arith.constant 0.000000e+00 : f32
    %120 = vector.broadcast %cst_73 : f32 to vector<32x128xf32>
    %121 = arith.select %119, %114, %120 : vector<32x128xi1>, vector<32x128xf32>
    %c127_i32_74 = arith.constant 127 : i32
    %122 = tpu.dynamic_rotate %111 by %c127_i32_74 dim 1 : vector<32x128xf32>, i32 -> vector<32x128xf32>
    %c-1_i32_75 = arith.constant -1 : i32
    %123 = vector.broadcast %c-1_i32_75 : i32 to vector<32x128xi32>
    %124 = arith.cmpi sge, %2, %123 : vector<32x128xi32>
    %c127_i32_76 = arith.constant 127 : i32
    %125 = vector.broadcast %c127_i32_76 : i32 to vector<32x128xi32>
    %126 = arith.cmpi slt, %2, %125 : vector<32x128xi32>
    %127 = arith.andi %124, %126 : vector<32x128xi1>
    %cst_77 = arith.constant 0.000000e+00 : f32
    %128 = vector.broadcast %cst_77 : f32 to vector<32x128xf32>
    %129 = arith.select %127, %122, %128 : vector<32x128xi1>, vector<32x128xf32>
    %130 = tpu.concatenate %121, %111, %129 in 0 : vector<32x128xf32>, vector<32x128xf32>, vector<32x128xf32> -> vector<96x128xf32>
    %cst_78 = arith.constant dense<0.000000e+00> : vector<32x128xf32>
    %131 = tpu.matmul %112, %130, %cst_78 {dimension_numbers = #tpu.dot_dimension_numbers<[1], [0], [0], [1], [0, 0, 1, 1], [], []>} : vector<32x96xf32>, vector<96x128xf32>, vector<32x128xf32> -> vector<32x128xf32>
    %132 = vector.broadcast %113 : vector<32x1xf32> to vector<32x128xf32>
    %133 = arith.addf %131, %132 : vector<32x128xf32>
    %134 = arith.addf %73, %133 : vector<32x128xf32>
    %c0_79 = arith.constant 0 : index
    %c0_80 = arith.constant 0 : index
    %135 = vector.load %arg22[%c0_79, %c0_80] : memref<32x1xf32, #tpu.memory_space<vmem>>, vector<32x1xf32>
    %136 = vector.broadcast %135 : vector<32x1xf32> to vector<32x128xf32>
    %137 = arith.mulf %134, %136 : vector<32x128xf32>
    %c0_81 = arith.constant 0 : index
    %c0_82 = arith.constant 0 : index
    %138 = vector.load %arg23[%c0_81, %c0_82] : memref<32x1xf32, #tpu.memory_space<vmem>>, vector<32x1xf32>
    %139 = vector.broadcast %138 : vector<32x1xf32> to vector<32x128xf32>
    %140 = arith.addf %137, %139 : vector<32x128xf32>
    %cst_83 = arith.constant 0.000000e+00 : f32
    %141 = vector.broadcast %cst_83 : f32 to vector<32x128xf32>
    %142 = arith.maximumf %140, %141 : vector<32x128xf32>
    %c0_84 = arith.constant 0 : index
    %c0_85 = arith.constant 0 : index
    %143 = vector.load %arg24[%c0_84, %c0_85] : memref<32x96xf32, #tpu.memory_space<vmem>>, vector<32x96xf32>
    %c0_86 = arith.constant 0 : index
    %c0_87 = arith.constant 0 : index
    %144 = vector.load %arg25[%c0_86, %c0_87] : memref<32x1xf32, #tpu.memory_space<vmem>>, vector<32x1xf32>
    %c2_i32 = arith.constant 2 : i32
    %145 = tpu.dynamic_rotate %142 by %c2_i32 dim 1 : vector<32x128xf32>, i32 -> vector<32x128xf32>
    %c2_i32_88 = arith.constant 2 : i32
    %146 = vector.broadcast %c2_i32_88 : i32 to vector<32x128xi32>
    %147 = arith.cmpi sge, %2, %146 : vector<32x128xi32>
    %c130_i32 = arith.constant 130 : i32
    %148 = vector.broadcast %c130_i32 : i32 to vector<32x128xi32>
    %149 = arith.cmpi slt, %2, %148 : vector<32x128xi32>
    %150 = arith.andi %147, %149 : vector<32x128xi1>
    %cst_89 = arith.constant 0.000000e+00 : f32
    %151 = vector.broadcast %cst_89 : f32 to vector<32x128xf32>
    %152 = arith.select %150, %145, %151 : vector<32x128xi1>, vector<32x128xf32>
    %c126_i32 = arith.constant 126 : i32
    %153 = tpu.dynamic_rotate %142 by %c126_i32 dim 1 : vector<32x128xf32>, i32 -> vector<32x128xf32>
    %c-2_i32 = arith.constant -2 : i32
    %154 = vector.broadcast %c-2_i32 : i32 to vector<32x128xi32>
    %155 = arith.cmpi sge, %2, %154 : vector<32x128xi32>
    %c126_i32_90 = arith.constant 126 : i32
    %156 = vector.broadcast %c126_i32_90 : i32 to vector<32x128xi32>
    %157 = arith.cmpi slt, %2, %156 : vector<32x128xi32>
    %158 = arith.andi %155, %157 : vector<32x128xi1>
    %cst_91 = arith.constant 0.000000e+00 : f32
    %159 = vector.broadcast %cst_91 : f32 to vector<32x128xf32>
    %160 = arith.select %158, %153, %159 : vector<32x128xi1>, vector<32x128xf32>
    %161 = tpu.concatenate %152, %142, %160 in 0 : vector<32x128xf32>, vector<32x128xf32>, vector<32x128xf32> -> vector<96x128xf32>
    %cst_92 = arith.constant dense<0.000000e+00> : vector<32x128xf32>
    %162 = tpu.matmul %143, %161, %cst_92 {dimension_numbers = #tpu.dot_dimension_numbers<[1], [0], [0], [1], [0, 0, 1, 1], [], []>} : vector<32x96xf32>, vector<96x128xf32>, vector<32x128xf32> -> vector<32x128xf32>
    %163 = vector.broadcast %144 : vector<32x1xf32> to vector<32x128xf32>
    %164 = arith.addf %162, %163 : vector<32x128xf32>
    %c0_93 = arith.constant 0 : index
    %c0_94 = arith.constant 0 : index
    %165 = vector.load %arg26[%c0_93, %c0_94] : memref<32x1xf32, #tpu.memory_space<vmem>>, vector<32x1xf32>
    %166 = vector.broadcast %165 : vector<32x1xf32> to vector<32x128xf32>
    %167 = arith.mulf %164, %166 : vector<32x128xf32>
    %c0_95 = arith.constant 0 : index
    %c0_96 = arith.constant 0 : index
    %168 = vector.load %arg27[%c0_95, %c0_96] : memref<32x1xf32, #tpu.memory_space<vmem>>, vector<32x1xf32>
    %169 = vector.broadcast %168 : vector<32x1xf32> to vector<32x128xf32>
    %170 = arith.addf %167, %169 : vector<32x128xf32>
    %cst_97 = arith.constant 0.000000e+00 : f32
    %171 = vector.broadcast %cst_97 : f32 to vector<32x128xf32>
    %172 = arith.maximumf %170, %171 : vector<32x128xf32>
    %c0_98 = arith.constant 0 : index
    %c0_99 = arith.constant 0 : index
    %173 = vector.load %arg28[%c0_98, %c0_99] : memref<32x96xf32, #tpu.memory_space<vmem>>, vector<32x96xf32>
    %c0_100 = arith.constant 0 : index
    %c0_101 = arith.constant 0 : index
    %174 = vector.load %arg29[%c0_100, %c0_101] : memref<32x1xf32, #tpu.memory_space<vmem>>, vector<32x1xf32>
    %c2_i32_102 = arith.constant 2 : i32
    %175 = tpu.dynamic_rotate %172 by %c2_i32_102 dim 1 : vector<32x128xf32>, i32 -> vector<32x128xf32>
    %c2_i32_103 = arith.constant 2 : i32
    %176 = vector.broadcast %c2_i32_103 : i32 to vector<32x128xi32>
    %177 = arith.cmpi sge, %2, %176 : vector<32x128xi32>
    %c130_i32_104 = arith.constant 130 : i32
    %178 = vector.broadcast %c130_i32_104 : i32 to vector<32x128xi32>
    %179 = arith.cmpi slt, %2, %178 : vector<32x128xi32>
    %180 = arith.andi %177, %179 : vector<32x128xi1>
    %cst_105 = arith.constant 0.000000e+00 : f32
    %181 = vector.broadcast %cst_105 : f32 to vector<32x128xf32>
    %182 = arith.select %180, %175, %181 : vector<32x128xi1>, vector<32x128xf32>
    %c126_i32_106 = arith.constant 126 : i32
    %183 = tpu.dynamic_rotate %172 by %c126_i32_106 dim 1 : vector<32x128xf32>, i32 -> vector<32x128xf32>
    %c-2_i32_107 = arith.constant -2 : i32
    %184 = vector.broadcast %c-2_i32_107 : i32 to vector<32x128xi32>
    %185 = arith.cmpi sge, %2, %184 : vector<32x128xi32>
    %c126_i32_108 = arith.constant 126 : i32
    %186 = vector.broadcast %c126_i32_108 : i32 to vector<32x128xi32>
    %187 = arith.cmpi slt, %2, %186 : vector<32x128xi32>
    %188 = arith.andi %185, %187 : vector<32x128xi1>
    %cst_109 = arith.constant 0.000000e+00 : f32
    %189 = vector.broadcast %cst_109 : f32 to vector<32x128xf32>
    %190 = arith.select %188, %183, %189 : vector<32x128xi1>, vector<32x128xf32>
    %191 = tpu.concatenate %182, %172, %190 in 0 : vector<32x128xf32>, vector<32x128xf32>, vector<32x128xf32> -> vector<96x128xf32>
    %cst_110 = arith.constant dense<0.000000e+00> : vector<32x128xf32>
    %192 = tpu.matmul %173, %191, %cst_110 {dimension_numbers = #tpu.dot_dimension_numbers<[1], [0], [0], [1], [0, 0, 1, 1], [], []>} : vector<32x96xf32>, vector<96x128xf32>, vector<32x128xf32> -> vector<32x128xf32>
    %193 = vector.broadcast %174 : vector<32x1xf32> to vector<32x128xf32>
    %194 = arith.addf %192, %193 : vector<32x128xf32>
    %195 = arith.addf %134, %194 : vector<32x128xf32>
    %c0_111 = arith.constant 0 : index
    %c0_112 = arith.constant 0 : index
    %196 = vector.load %arg30[%c0_111, %c0_112] : memref<32x1xf32, #tpu.memory_space<vmem>>, vector<32x1xf32>
    %197 = vector.broadcast %196 : vector<32x1xf32> to vector<32x128xf32>
    %198 = arith.mulf %195, %197 : vector<32x128xf32>
    %c0_113 = arith.constant 0 : index
    %c0_114 = arith.constant 0 : index
    %199 = vector.load %arg31[%c0_113, %c0_114] : memref<32x1xf32, #tpu.memory_space<vmem>>, vector<32x1xf32>
    %200 = vector.broadcast %199 : vector<32x1xf32> to vector<32x128xf32>
    %201 = arith.addf %198, %200 : vector<32x128xf32>
    %cst_115 = arith.constant 0.000000e+00 : f32
    %202 = vector.broadcast %cst_115 : f32 to vector<32x128xf32>
    %203 = arith.maximumf %201, %202 : vector<32x128xf32>
    %c0_116 = arith.constant 0 : index
    %c0_117 = arith.constant 0 : index
    %204 = vector.load %arg32[%c0_116, %c0_117] : memref<32x96xf32, #tpu.memory_space<vmem>>, vector<32x96xf32>
    %c0_118 = arith.constant 0 : index
    %c0_119 = arith.constant 0 : index
    %205 = vector.load %arg33[%c0_118, %c0_119] : memref<32x1xf32, #tpu.memory_space<vmem>>, vector<32x1xf32>
    %c4_i32 = arith.constant 4 : i32
    %206 = tpu.dynamic_rotate %203 by %c4_i32 dim 1 : vector<32x128xf32>, i32 -> vector<32x128xf32>
    %c4_i32_120 = arith.constant 4 : i32
    %207 = vector.broadcast %c4_i32_120 : i32 to vector<32x128xi32>
    %208 = arith.cmpi sge, %2, %207 : vector<32x128xi32>
    %c132_i32 = arith.constant 132 : i32
    %209 = vector.broadcast %c132_i32 : i32 to vector<32x128xi32>
    %210 = arith.cmpi slt, %2, %209 : vector<32x128xi32>
    %211 = arith.andi %208, %210 : vector<32x128xi1>
    %cst_121 = arith.constant 0.000000e+00 : f32
    %212 = vector.broadcast %cst_121 : f32 to vector<32x128xf32>
    %213 = arith.select %211, %206, %212 : vector<32x128xi1>, vector<32x128xf32>
    %c124_i32 = arith.constant 124 : i32
    %214 = tpu.dynamic_rotate %203 by %c124_i32 dim 1 : vector<32x128xf32>, i32 -> vector<32x128xf32>
    %c-4_i32 = arith.constant -4 : i32
    %215 = vector.broadcast %c-4_i32 : i32 to vector<32x128xi32>
    %216 = arith.cmpi sge, %2, %215 : vector<32x128xi32>
    %c124_i32_122 = arith.constant 124 : i32
    %217 = vector.broadcast %c124_i32_122 : i32 to vector<32x128xi32>
    %218 = arith.cmpi slt, %2, %217 : vector<32x128xi32>
    %219 = arith.andi %216, %218 : vector<32x128xi1>
    %cst_123 = arith.constant 0.000000e+00 : f32
    %220 = vector.broadcast %cst_123 : f32 to vector<32x128xf32>
    %221 = arith.select %219, %214, %220 : vector<32x128xi1>, vector<32x128xf32>
    %222 = tpu.concatenate %213, %203, %221 in 0 : vector<32x128xf32>, vector<32x128xf32>, vector<32x128xf32> -> vector<96x128xf32>
    %cst_124 = arith.constant dense<0.000000e+00> : vector<32x128xf32>
    %223 = tpu.matmul %204, %222, %cst_124 {dimension_numbers = #tpu.dot_dimension_numbers<[1], [0], [0], [1], [0, 0, 1, 1], [], []>} : vector<32x96xf32>, vector<96x128xf32>, vector<32x128xf32> -> vector<32x128xf32>
    %224 = vector.broadcast %205 : vector<32x1xf32> to vector<32x128xf32>
    %225 = arith.addf %223, %224 : vector<32x128xf32>
    %c0_125 = arith.constant 0 : index
    %c0_126 = arith.constant 0 : index
    %226 = vector.load %arg34[%c0_125, %c0_126] : memref<32x1xf32, #tpu.memory_space<vmem>>, vector<32x1xf32>
    %227 = vector.broadcast %226 : vector<32x1xf32> to vector<32x128xf32>
    %228 = arith.mulf %225, %227 : vector<32x128xf32>
    %c0_127 = arith.constant 0 : index
    %c0_128 = arith.constant 0 : index
    %229 = vector.load %arg35[%c0_127, %c0_128] : memref<32x1xf32, #tpu.memory_space<vmem>>, vector<32x1xf32>
    %230 = vector.broadcast %229 : vector<32x1xf32> to vector<32x128xf32>
    %231 = arith.addf %228, %230 : vector<32x128xf32>
    %cst_129 = arith.constant 0.000000e+00 : f32
    %232 = vector.broadcast %cst_129 : f32 to vector<32x128xf32>
    %233 = arith.maximumf %231, %232 : vector<32x128xf32>
    %c0_130 = arith.constant 0 : index
    %c0_131 = arith.constant 0 : index
    %234 = vector.load %arg36[%c0_130, %c0_131] : memref<32x96xf32, #tpu.memory_space<vmem>>, vector<32x96xf32>
    %c0_132 = arith.constant 0 : index
    %c0_133 = arith.constant 0 : index
    %235 = vector.load %arg37[%c0_132, %c0_133] : memref<32x1xf32, #tpu.memory_space<vmem>>, vector<32x1xf32>
    %c4_i32_134 = arith.constant 4 : i32
    %236 = tpu.dynamic_rotate %233 by %c4_i32_134 dim 1 : vector<32x128xf32>, i32 -> vector<32x128xf32>
    %c4_i32_135 = arith.constant 4 : i32
    %237 = vector.broadcast %c4_i32_135 : i32 to vector<32x128xi32>
    %238 = arith.cmpi sge, %2, %237 : vector<32x128xi32>
    %c132_i32_136 = arith.constant 132 : i32
    %239 = vector.broadcast %c132_i32_136 : i32 to vector<32x128xi32>
    %240 = arith.cmpi slt, %2, %239 : vector<32x128xi32>
    %241 = arith.andi %238, %240 : vector<32x128xi1>
    %cst_137 = arith.constant 0.000000e+00 : f32
    %242 = vector.broadcast %cst_137 : f32 to vector<32x128xf32>
    %243 = arith.select %241, %236, %242 : vector<32x128xi1>, vector<32x128xf32>
    %c124_i32_138 = arith.constant 124 : i32
    %244 = tpu.dynamic_rotate %233 by %c124_i32_138 dim 1 : vector<32x128xf32>, i32 -> vector<32x128xf32>
    %c-4_i32_139 = arith.constant -4 : i32
    %245 = vector.broadcast %c-4_i32_139 : i32 to vector<32x128xi32>
    %246 = arith.cmpi sge, %2, %245 : vector<32x128xi32>
    %c124_i32_140 = arith.constant 124 : i32
    %247 = vector.broadcast %c124_i32_140 : i32 to vector<32x128xi32>
    %248 = arith.cmpi slt, %2, %247 : vector<32x128xi32>
    %249 = arith.andi %246, %248 : vector<32x128xi1>
    %cst_141 = arith.constant 0.000000e+00 : f32
    %250 = vector.broadcast %cst_141 : f32 to vector<32x128xf32>
    %251 = arith.select %249, %244, %250 : vector<32x128xi1>, vector<32x128xf32>
    %252 = tpu.concatenate %243, %233, %251 in 0 : vector<32x128xf32>, vector<32x128xf32>, vector<32x128xf32> -> vector<96x128xf32>
    %cst_142 = arith.constant dense<0.000000e+00> : vector<32x128xf32>
    %253 = tpu.matmul %234, %252, %cst_142 {dimension_numbers = #tpu.dot_dimension_numbers<[1], [0], [0], [1], [0, 0, 1, 1], [], []>} : vector<32x96xf32>, vector<96x128xf32>, vector<32x128xf32> -> vector<32x128xf32>
    %254 = vector.broadcast %235 : vector<32x1xf32> to vector<32x128xf32>
    %255 = arith.addf %253, %254 : vector<32x128xf32>
    %256 = arith.addf %195, %255 : vector<32x128xf32>
    %c0_143 = arith.constant 0 : index
    %c0_144 = arith.constant 0 : index
    %257 = vector.load %arg38[%c0_143, %c0_144] : memref<32x32xf32, #tpu.memory_space<vmem>>, vector<32x32xf32>
    %cst_145 = arith.constant dense<0.000000e+00> : vector<32x128xf32>
    %258 = tpu.matmul %257, %256, %cst_145 {dimension_numbers = #tpu.dot_dimension_numbers<[1], [0], [0], [1], [0, 0, 1, 1], [], []>} : vector<32x32xf32>, vector<32x128xf32>, vector<32x128xf32> -> vector<32x128xf32>
    %259 = arith.addf %12, %258 : vector<32x128xf32>
    %c0_146 = arith.constant 0 : index
    %c0_147 = arith.constant 0 : index
    %260 = vector.load %arg39[%c0_146, %c0_147] : memref<32x1xf32, #tpu.memory_space<vmem>>, vector<32x1xf32>
    %261 = vector.broadcast %260 : vector<32x1xf32> to vector<32x128xf32>
    %262 = arith.addf %259, %261 : vector<32x128xf32>
    %c112_i32 = arith.constant 112 : i32
    %263 = tpu.dynamic_rotate %262 by %c112_i32 dim 1 : vector<32x128xf32>, i32 -> vector<32x128xf32>
    %264 = vector.extract_strided_slice %263 {offsets = [0, 0], sizes = [32, 96], strides = [1, 1]} : vector<32x128xf32> to vector<32x96xf32>
    %c0_148 = arith.constant 0 : index
    %c0_149 = arith.constant 0 : index
    %c0_150 = arith.constant 0 : index
    %265 = vector.load %arg43[%c0_148, %c0_149, %c0_150] : memref<1x32x96xf32, #tpu.memory_space<vmem>>, vector<1x32x96xf32>
    %266 = vector.shape_cast %265 : vector<1x32x96xf32> to vector<32x96xf32>
    %267 = vector.shape_cast %264 : vector<32x96xf32> to vector<1x32x96xf32>
    tpu.vector_store %arg43[%c0_148, %c0_149, %c0_150], %267 {strides = array<i32>} : memref<1x32x96xf32, #tpu.memory_space<vmem>>, vector<1x32x96xf32>,
    %c0_151 = arith.constant 0 : index
    %c0_152 = arith.constant 0 : index
    %268 = vector.load %arg40[%c0_151, %c0_152] : memref<3x32xf32, #tpu.memory_space<vmem>>, vector<3x32xf32>
    %cst_153 = arith.constant dense<0.000000e+00> : vector<3x96xf32>
    %269 = tpu.matmul %268, %264, %cst_153 {dimension_numbers = #tpu.dot_dimension_numbers<[1], [0], [0], [1], [0, 0, 1, 1], [], []>} : vector<3x32xf32>, vector<32x96xf32>, vector<3x96xf32> -> vector<3x96xf32>
    %c0_154 = arith.constant 0 : index
    %c0_155 = arith.constant 0 : index
    %270 = vector.load %arg41[%c0_154, %c0_155] : memref<3x1xf32, #tpu.memory_space<vmem>>, vector<3x1xf32>
    %271 = vector.broadcast %270 : vector<3x1xf32> to vector<3x96xf32>
    %272 = arith.addf %269, %271 : vector<3x96xf32>
    %cst_156 = arith.constant dense<0xFF800000> : vector<96xf32>
    %273 = vector.multi_reduction <maximumf>, %272, %cst_156 [0] : vector<3x96xf32> to vector<96xf32>
    %274 = vector.shape_cast %273 : vector<96xf32> to vector<1x96xf32>
    %275 = vector.broadcast %274 : vector<1x96xf32> to vector<3x96xf32>
    %276 = arith.subf %272, %275 : vector<3x96xf32>
    %277 = math.exp %276 : vector<3x96xf32>
    %cst_157 = arith.constant dense<0.000000e+00> : vector<96xf32>
    %278 = vector.multi_reduction <add>, %277, %cst_157 [0] : vector<3x96xf32> to vector<96xf32>
    %279 = vector.shape_cast %278 : vector<96xf32> to vector<1x96xf32>
    %280 = vector.broadcast %279 : vector<1x96xf32> to vector<3x96xf32>
    %281 = arith.divf %277, %280 : vector<3x96xf32>
    %c0_158 = arith.constant 0 : index
    %c0_159 = arith.constant 0 : index
    %c0_160 = arith.constant 0 : index
    %282 = vector.load %arg42[%c0_158, %c0_159, %c0_160] : memref<1x3x96xf32, #tpu.memory_space<vmem>>, vector<1x3x96xf32>
    %283 = vector.shape_cast %282 : vector<1x3x96xf32> to vector<3x96xf32>
    %284 = vector.shape_cast %281 : vector<3x96xf32> to vector<1x3x96xf32>
    tpu.vector_store %arg42[%c0_158, %c0_159, %c0_160], %284 {strides = array<i32>} : memref<1x3x96xf32, #tpu.memory_space<vmem>>, vector<1x3x96xf32>,
    return
  }
  func.func @transform_0(%arg0: i32) -> (i32, i32, i32) {
    %c0_i32 = arith.constant 0 : i32
    %c0_i32_0 = arith.constant 0 : i32
    %c0_i32_1 = arith.constant 0 : i32
    return %arg0, %c0_i32, %c0_i32_0 : i32, i32, i32
  }
  func.func @transform_1(%arg0: i32) -> (i32, i32) {
    %c0_i32 = arith.constant 0 : i32
    %c0_i32_0 = arith.constant 0 : i32
    %c0_i32_1 = arith.constant 0 : i32
    return %c0_i32, %c0_i32_0 : i32, i32
  }
  func.func @transform_2(%arg0: i32) -> (i32, i32) {
    %c0_i32 = arith.constant 0 : i32
    %c0_i32_0 = arith.constant 0 : i32
    %c0_i32_1 = arith.constant 0 : i32
    return %c0_i32, %c0_i32_0 : i32, i32
  }
  func.func @transform_3(%arg0: i32) -> (i32, i32) {
    %c0_i32 = arith.constant 0 : i32
    %c0_i32_0 = arith.constant 0 : i32
    %c0_i32_1 = arith.constant 0 : i32
    return %c0_i32, %c0_i32_0 : i32, i32
  }
  func.func @transform_4(%arg0: i32) -> (i32, i32) {
    %c0_i32 = arith.constant 0 : i32
    %c0_i32_0 = arith.constant 0 : i32
    %c0_i32_1 = arith.constant 0 : i32
    return %c0_i32, %c0_i32_0 : i32, i32
  }
  func.func @transform_5(%arg0: i32) -> (i32, i32) {
    %c0_i32 = arith.constant 0 : i32
    %c0_i32_0 = arith.constant 0 : i32
    %c0_i32_1 = arith.constant 0 : i32
    return %c0_i32, %c0_i32_0 : i32, i32
  }
  func.func @transform_6(%arg0: i32) -> (i32, i32) {
    %c0_i32 = arith.constant 0 : i32
    %c0_i32_0 = arith.constant 0 : i32
    %c0_i32_1 = arith.constant 0 : i32
    return %c0_i32, %c0_i32_0 : i32, i32
  }
  func.func @transform_7(%arg0: i32) -> (i32, i32) {
    %c0_i32 = arith.constant 0 : i32
    %c0_i32_0 = arith.constant 0 : i32
    %c0_i32_1 = arith.constant 0 : i32
    return %c0_i32, %c0_i32_0 : i32, i32
  }
  func.func @transform_8(%arg0: i32) -> (i32, i32) {
    %c0_i32 = arith.constant 0 : i32
    %c0_i32_0 = arith.constant 0 : i32
    %c0_i32_1 = arith.constant 0 : i32
    return %c0_i32, %c0_i32_0 : i32, i32
  }
  func.func @transform_9(%arg0: i32) -> (i32, i32) {
    %c0_i32 = arith.constant 0 : i32
    %c0_i32_0 = arith.constant 0 : i32
    %c0_i32_1 = arith.constant 0 : i32
    return %c0_i32, %c0_i32_0 : i32, i32
  }
  func.func @transform_10(%arg0: i32) -> (i32, i32) {
    %c0_i32 = arith.constant 0 : i32
    %c0_i32_0 = arith.constant 0 : i32
    %c0_i32_1 = arith.constant 0 : i32
    return %c0_i32, %c0_i32_0 : i32, i32
  }
  func.func @transform_11(%arg0: i32) -> (i32, i32) {
    %c0_i32 = arith.constant 0 : i32
    %c0_i32_0 = arith.constant 0 : i32
    %c0_i32_1 = arith.constant 0 : i32
    return %c0_i32, %c0_i32_0 : i32, i32
  }
  func.func @transform_12(%arg0: i32) -> (i32, i32) {
    %c0_i32 = arith.constant 0 : i32
    %c0_i32_0 = arith.constant 0 : i32
    %c0_i32_1 = arith.constant 0 : i32
    return %c0_i32, %c0_i32_0 : i32, i32
  }
  func.func @transform_13(%arg0: i32) -> (i32, i32) {
    %c0_i32 = arith.constant 0 : i32
    %c0_i32_0 = arith.constant 0 : i32
    %c0_i32_1 = arith.constant 0 : i32
    return %c0_i32, %c0_i32_0 : i32, i32
  }
  func.func @transform_14(%arg0: i32) -> (i32, i32) {
    %c0_i32 = arith.constant 0 : i32
    %c0_i32_0 = arith.constant 0 : i32
    %c0_i32_1 = arith.constant 0 : i32
    return %c0_i32, %c0_i32_0 : i32, i32
  }
  func.func @transform_15(%arg0: i32) -> (i32, i32) {
    %c0_i32 = arith.constant 0 : i32
    %c0_i32_0 = arith.constant 0 : i32
    %c0_i32_1 = arith.constant 0 : i32
    return %c0_i32, %c0_i32_0 : i32, i32
  }
  func.func @transform_16(%arg0: i32) -> (i32, i32) {
    %c0_i32 = arith.constant 0 : i32
    %c0_i32_0 = arith.constant 0 : i32
    %c0_i32_1 = arith.constant 0 : i32
    return %c0_i32, %c0_i32_0 : i32, i32
  }
  func.func @transform_17(%arg0: i32) -> (i32, i32) {
    %c0_i32 = arith.constant 0 : i32
    %c0_i32_0 = arith.constant 0 : i32
    %c0_i32_1 = arith.constant 0 : i32
    return %c0_i32, %c0_i32_0 : i32, i32
  }
  func.func @transform_18(%arg0: i32) -> (i32, i32) {
    %c0_i32 = arith.constant 0 : i32
    %c0_i32_0 = arith.constant 0 : i32
    %c0_i32_1 = arith.constant 0 : i32
    return %c0_i32, %c0_i32_0 : i32, i32
  }
  func.func @transform_19(%arg0: i32) -> (i32, i32) {
    %c0_i32 = arith.constant 0 : i32
    %c0_i32_0 = arith.constant 0 : i32
    %c0_i32_1 = arith.constant 0 : i32
    return %c0_i32, %c0_i32_0 : i32, i32
  }
  func.func @transform_20(%arg0: i32) -> (i32, i32) {
    %c0_i32 = arith.constant 0 : i32
    %c0_i32_0 = arith.constant 0 : i32
    %c0_i32_1 = arith.constant 0 : i32
    return %c0_i32, %c0_i32_0 : i32, i32
  }
  func.func @transform_21(%arg0: i32) -> (i32, i32) {
    %c0_i32 = arith.constant 0 : i32
    %c0_i32_0 = arith.constant 0 : i32
    %c0_i32_1 = arith.constant 0 : i32
    return %c0_i32, %c0_i32_0 : i32, i32
  }
  func.func @transform_22(%arg0: i32) -> (i32, i32) {
    %c0_i32 = arith.constant 0 : i32
    %c0_i32_0 = arith.constant 0 : i32
    %c0_i32_1 = arith.constant 0 : i32
    return %c0_i32, %c0_i32_0 : i32, i32
  }
  func.func @transform_23(%arg0: i32) -> (i32, i32) {
    %c0_i32 = arith.constant 0 : i32
    %c0_i32_0 = arith.constant 0 : i32
    %c0_i32_1 = arith.constant 0 : i32
    return %c0_i32, %c0_i32_0 : i32, i32
  }
  func.func @transform_24(%arg0: i32) -> (i32, i32) {
    %c0_i32 = arith.constant 0 : i32
    %c0_i32_0 = arith.constant 0 : i32
    %c0_i32_1 = arith.constant 0 : i32
    return %c0_i32, %c0_i32_0 : i32, i32
  }
  func.func @transform_25(%arg0: i32) -> (i32, i32) {
    %c0_i32 = arith.constant 0 : i32
    %c0_i32_0 = arith.constant 0 : i32
    %c0_i32_1 = arith.constant 0 : i32
    return %c0_i32, %c0_i32_0 : i32, i32
  }
  func.func @transform_26(%arg0: i32) -> (i32, i32) {
    %c0_i32 = arith.constant 0 : i32
    %c0_i32_0 = arith.constant 0 : i32
    %c0_i32_1 = arith.constant 0 : i32
    return %c0_i32, %c0_i32_0 : i32, i32
  }
  func.func @transform_27(%arg0: i32) -> (i32, i32) {
    %c0_i32 = arith.constant 0 : i32
    %c0_i32_0 = arith.constant 0 : i32
    %c0_i32_1 = arith.constant 0 : i32
    return %c0_i32, %c0_i32_0 : i32, i32
  }
  func.func @transform_28(%arg0: i32) -> (i32, i32) {
    %c0_i32 = arith.constant 0 : i32
    %c0_i32_0 = arith.constant 0 : i32
    %c0_i32_1 = arith.constant 0 : i32
    return %c0_i32, %c0_i32_0 : i32, i32
  }
  func.func @transform_29(%arg0: i32) -> (i32, i32) {
    %c0_i32 = arith.constant 0 : i32
    %c0_i32_0 = arith.constant 0 : i32
    %c0_i32_1 = arith.constant 0 : i32
    return %c0_i32, %c0_i32_0 : i32, i32
  }
  func.func @transform_30(%arg0: i32) -> (i32, i32) {
    %c0_i32 = arith.constant 0 : i32
    %c0_i32_0 = arith.constant 0 : i32
    %c0_i32_1 = arith.constant 0 : i32
    return %c0_i32, %c0_i32_0 : i32, i32
  }
  func.func @transform_31(%arg0: i32) -> (i32, i32) {
    %c0_i32 = arith.constant 0 : i32
    %c0_i32_0 = arith.constant 0 : i32
    %c0_i32_1 = arith.constant 0 : i32
    return %c0_i32, %c0_i32_0 : i32, i32
  }
  func.func @transform_32(%arg0: i32) -> (i32, i32) {
    %c0_i32 = arith.constant 0 : i32
    %c0_i32_0 = arith.constant 0 : i32
    %c0_i32_1 = arith.constant 0 : i32
    return %c0_i32, %c0_i32_0 : i32, i32
  }
  func.func @transform_33(%arg0: i32) -> (i32, i32) {
    %c0_i32 = arith.constant 0 : i32
    %c0_i32_0 = arith.constant 0 : i32
    %c0_i32_1 = arith.constant 0 : i32
    return %c0_i32, %c0_i32_0 : i32, i32
  }
  func.func @transform_34(%arg0: i32) -> (i32, i32) {
    %c0_i32 = arith.constant 0 : i32
    %c0_i32_0 = arith.constant 0 : i32
    %c0_i32_1 = arith.constant 0 : i32
    return %c0_i32, %c0_i32_0 : i32, i32
  }
  func.func @transform_35(%arg0: i32) -> (i32, i32) {
    %c0_i32 = arith.constant 0 : i32
    %c0_i32_0 = arith.constant 0 : i32
    %c0_i32_1 = arith.constant 0 : i32
    return %c0_i32, %c0_i32_0 : i32, i32
  }
  func.func @transform_36(%arg0: i32) -> (i32, i32) {
    %c0_i32 = arith.constant 0 : i32
    %c0_i32_0 = arith.constant 0 : i32
    %c0_i32_1 = arith.constant 0 : i32
    return %c0_i32, %c0_i32_0 : i32, i32
  }
  func.func @transform_37(%arg0: i32) -> (i32, i32) {
    %c0_i32 = arith.constant 0 : i32
    %c0_i32_0 = arith.constant 0 : i32
    %c0_i32_1 = arith.constant 0 : i32
    return %c0_i32, %c0_i32_0 : i32, i32
  }
  func.func @transform_38(%arg0: i32) -> (i32, i32) {
    %c0_i32 = arith.constant 0 : i32
    %c0_i32_0 = arith.constant 0 : i32
    %c0_i32_1 = arith.constant 0 : i32
    return %c0_i32, %c0_i32_0 : i32, i32
  }
  func.func @transform_39(%arg0: i32) -> (i32, i32) {
    %c0_i32 = arith.constant 0 : i32
    %c0_i32_0 = arith.constant 0 : i32
    %c0_i32_1 = arith.constant 0 : i32
    return %c0_i32, %c0_i32_0 : i32, i32
  }
  func.func @transform_40(%arg0: i32) -> (i32, i32) {
    %c0_i32 = arith.constant 0 : i32
    %c0_i32_0 = arith.constant 0 : i32
    %c0_i32_1 = arith.constant 0 : i32
    return %c0_i32, %c0_i32_0 : i32, i32
  }
  func.func @transform_41(%arg0: i32) -> (i32, i32, i32) {
    %c0_i32 = arith.constant 0 : i32
    %c0_i32_0 = arith.constant 0 : i32
    %c0_i32_1 = arith.constant 0 : i32
    return %arg0, %c0_i32, %c0_i32_0 : i32, i32, i32
  }
  func.func @transform_42(%arg0: i32) -> (i32, i32, i32) {
    %c0_i32 = arith.constant 0 : i32
    %c0_i32_0 = arith.constant 0 : i32
    %c0_i32_1 = arith.constant 0 : i32
    return %arg0, %c0_i32, %c0_i32_0 : i32, i32, i32
  }
}

</mosaic_0001>

<bundles_post_ra>
// kernel: tpu_custom_call.1
= control target key start
LH: loop header
LB: loop body
LE: loop exit
PB: predicated region body
PF: predicated region fallthrough
CT: control target
= control target key end

     0   :  { %s4803_s6 = smov 1   ;;  %s4804_s10 = smov 2   ;;  %s5665_s0 = inlined_call_operand.smem [shape: u32[43], index: -1, kind: input, shape index: {}] }
   0x1   :  { %s4867_s5 = sld [smem:[%s5665_s0]]   ;;  %s4805_s14 = smov 3  }
   0x2   :  { %s4872_s9 = sld [smem:[%s5665_s0 + %s4803_s6]]   ;;  %s4806_s18 = smov 4  }
   0x3   :  { %s4877_s13 = sld [smem:[%s5665_s0 + %s4804_s10]]   ;;  %s4807_s22 = smov 5  }
   0x4   :  { %s4882_s17 = sld [smem:[%s5665_s0 + %s4805_s14]]   ;;  %s4808_s26 = smov 6  }
   0x5   :  { %s4887_s21 = sld [smem:[%s5665_s0 + %s4806_s18]]   ;;  %s4809_s30 = smov 7  }
   0x6   :  { %s4892_s25 = sld [smem:[%s5665_s0 + %s4807_s22]]   ;;  %s4810_s4 = smov 8  }
   0x7   :  { %5734 = sst [smem:[#allocation5_spill]] %s4867_s5  ;;  %s4811_s10 = smov 9  }
   0x8   :  { %5735 = sst [smem:[#allocation6_spill]] %s4872_s9  ;;  %s4812_s15 = smov 10  }
   0x9   :  { %5736 = sst [smem:[#allocation7_spill]] %s4877_s13  ;;  %s4813_s20 = smov 11  }
   0xa   :  { %5737 = sst [smem:[#allocation8_spill]] %s4882_s17  ;;  %s4815_s1 = smov 13  }
   0xb   :  { %5738 = sst [smem:[#allocation9_spill]] %s4887_s21  ;;  %s4816_s7 = smov 14  }
   0xc   :  { %s4897_s29 = sld [smem:[%s5665_s0 + %s4808_s26]]   ;;  %s4814_s26 = smov 12  }
   0xd   :  { %s4902_s3 = sld [smem:[%s5665_s0 + %s4809_s30]]   ;;  %s4818_s22 = smov 16  }
   0xe   :  { %s4907_s8 = sld [smem:[%s5665_s0 + %s4810_s4]]   ;;  %s4819_s28 = smov 17  }
   0xf   :  { %s4912_s14 = sld [smem:[%s5665_s0 + %s4811_s10]]  }
  0x10   :  { %s4917_s19 = sld [smem:[%s5665_s0 + %s4812_s15]]   ;;  %s4817_s15 = smov 15  }
  0x11   :  { %s4922_s24 = sld [smem:[%s5665_s0 + %s4813_s20]]  }
  0x12   :  { %s4927_s30 = sld [smem:[%s5665_s0 + %s4814_s26]]  }
  0x13   :  { %5739 = sst [smem:[#allocation10_spill]] %s4902_s3 }
  0x14   :  { %5740 = sst [smem:[#allocation11_spill]] %s4907_s8 }
  0x15   :  { %5741 = sst [smem:[#allocation12_spill]] %s4912_s14 }
  0x16   :  { %s4932_s6 = sld [smem:[%s5665_s0 + %s4815_s1]]  }
  0x17   :  { %s4937_s12 = sld [smem:[%s5665_s0 + %s4816_s7]]   ;;  %s4820_s7 = smov 18  }
  0x18   :  { %s4942_s20 = sld [smem:[%s5665_s0 + %s4817_s15]]   ;;  %s4821_s15 = smov 19  }
  0x19   :  { %s4947_s27 = sld [smem:[%s5665_s0 + %s4818_s22]]   ;;  %s4822_s22 = smov 20  }
  0x1a   :  { %s4952_s4 = sld [smem:[%s5665_s0 + %s4819_s28]]   ;;  %s4823_s28 = smov 21  }
  0x1b   :  { %s4957_s21 = sld [smem:[%s5665_s0 + %s4820_s7]]   ;;  %s4824_s7 = smov 22  }
  0x1c   :  { %5742 = sst [smem:[#allocation13_spill]] %s4932_s6 }
  0x1d   :  { %5743 = sst [smem:[#allocation14_spill]] %s4937_s12 }
  0x1e   :  { %5744 = sst [smem:[#allocation15_spill]] %s4942_s20 }
  0x1f   :  { %5745 = sst [smem:[#allocation16_spill]] %s4947_s27 }
  0x20   :  { %5746 = sst [smem:[#allocation17_spill]] %s4952_s4 }
  0x21   :  { %5747 = sst [smem:[#allocation18_spill]] %s4957_s21 }
  0x22   :  { %s4962_s20 = sld [smem:[%s5665_s0 + %s4821_s15]]   ;;  %s4825_s15 = smov 23  }
  0x23   :  { %s4967_s27 = sld [smem:[%s5665_s0 + %s4822_s22]]   ;;  %s4826_s22 = smov 24  }
  0x24   :  { %s4972_s4 = sld [smem:[%s5665_s0 + %s4823_s28]]   ;;  %s4827_s28 = smov 25  }
  0x25   :  { %s4977_s21 = sld [smem:[%s5665_s0 + %s4824_s7]]   ;;  %s4828_s7 = smov 26  }
  0x28   :  { %5748 = sst [smem:[#allocation19_spill]] %s4962_s20 }
  0x29   :  { %5749 = sst [smem:[#allocation20_spill]] %s4967_s27 }
  0x2a   :  { %5750 = sst [smem:[#allocation21_spill]] %s4972_s4 }
  0x2b   :  { %5751 = sst [smem:[#allocation22_spill]] %s4977_s21 }
  0x2c   :  { %s4982_s20 = sld [smem:[%s5665_s0 + %s4825_s15]]   ;;  %s4829_s15 = smov 27  }
  0x2d   :  { %s4987_s27 = sld [smem:[%s5665_s0 + %s4826_s22]]   ;;  %s4830_s22 = smov 28  }
  0x2e   :  { %s4992_s4 = sld [smem:[%s5665_s0 + %s4827_s28]]   ;;  %s4831_s28 = smov 29  }
  0x2f   :  { %s4997_s21 = sld [smem:[%s5665_s0 + %s4828_s7]]   ;;  %s4832_s7 = smov 30  }
  0x32   :  { %5752 = sst [smem:[#allocation23_spill]] %s4982_s20 }
  0x33   :  { %5753 = sst [smem:[#allocation24_spill]] %s4987_s27 }
  0x34   :  { %5754 = sst [smem:[#allocation25_spill]] %s4992_s4 }
  0x35   :  { %5755 = sst [smem:[#allocation26_spill]] %s4997_s21 }
  0x36   :  { %s5002_s20 = sld [smem:[%s5665_s0 + %s4829_s15]]   ;;  %s4833_s15 = smov 31  }
  0x37   :  { %s5007_s27 = sld [smem:[%s5665_s0 + %s4830_s22]]   ;;  %s4834_s22 = smov 32  }
  0x38   :  { %s5012_s4 = sld [smem:[%s5665_s0 + %s4831_s28]]   ;;  %s4835_s28 = smov 33  }
  0x39   :  { %s5017_s21 = sld [smem:[%s5665_s0 + %s4832_s7]]   ;;  %s4836_s7 = smov 34  }
  0x3c   :  { %5756 = sst [smem:[#allocation27_spill]] %s5002_s20 }
  0x3d   :  { %5757 = sst [smem:[#allocation28_spill]] %s5007_s27 }
  0x3e   :  { %5758 = sst [smem:[#allocation29_spill]] %s5012_s4 }
  0x3f   :  { %5759 = sst [smem:[#allocation30_spill]] %s5017_s21 }
  0x40   :  { %s5022_s20 = sld [smem:[%s5665_s0 + %s4833_s15]]   ;;  %s4837_s15 = smov 35  }
  0x41   :  { %s5027_s27 = sld [smem:[%s5665_s0 + %s4834_s22]]   ;;  %s4838_s22 = smov 36  }
  0x42   :  { %s5032_s4 = sld [smem:[%s5665_s0 + %s4835_s28]]   ;;  %s4839_s28 = smov 37  }
  0x43   :  { %s5037_s21 = sld [smem:[%s5665_s0 + %s4836_s7]]   ;;  %s4840_s7 = smov 38  }
  0x46   :  { %5760 = sst [smem:[#allocation31_spill]] %s5022_s20 }
  0x47   :  { %5761 = sst [smem:[#allocation32_spill]] %s5027_s27 }
  0x48   :  { %5762 = sst [smem:[#allocation33_spill]] %s5032_s4 }
  0x49   :  { %5763 = sst [smem:[#allocation34_spill]] %s5037_s21 }
  0x4a   :  { %s5042_s20 = sld [smem:[%s5665_s0 + %s4837_s15]]   ;;  %s4841_s15 = smov 39  }
  0x4b   :  { %s5047_s27 = sld [smem:[%s5665_s0 + %s4838_s22]]   ;;  %s4842_s22 = smov 40  }
  0x4c   :  { %s5052_s4 = sld [smem:[%s5665_s0 + %s4839_s28]]   ;;  %s4843_s28 = smov 41  }
  0x4d   :  { %s5057_s21 = sld [smem:[%s5665_s0 + %s4840_s7]]   ;;  %s4844_s7 = smov 42  }
  0x50   :  { %5764 = sst [smem:[#allocation35_spill]] %s5042_s20 }
  0x51   :  { %5765 = sst [smem:[#allocation36_spill]] %s5047_s27 }
  0x52   :  { %5766 = sst [smem:[#allocation37_spill]] %s5052_s4 }
  0x53   :  { %5767 = sst [smem:[#allocation38_spill]] %s5057_s21 }
  0x54   :  { %s5062_s20 = sld [smem:[%s5665_s0 + %s4841_s15]]  }
  0x55   :  { %s5067_s27 = sld [smem:[%s5665_s0 + %s4842_s22]]  }
  0x56   :  { %s5072_s4 = sld [smem:[%s5665_s0 + %s4843_s28]]  }
  0x57   :  { %s5077_s21 = sld [smem:[%s5665_s0 + %s4844_s7]]  }
  0x58   :  { %91 = vsyncpa [#allocation3], 0 }
  0x59   :  { %93 = vsyncpa [#allocation3 + $0x1], 0  ;;  %s5079_s15 = smov 0   ;;  %s5081_s16 = smov 0  }
  0x5a   :  { %s5083_s18 = smov 0   ;;  %s5085_s22 = smov 0  }
  0x5b LB: > { %s5768_s17 = sld [smem:[#allocation8_spill]]  ;;  %s5769_s14 = sld [smem:[#allocation12_spill]]  ;;  %s4801_s22 = sphi %s5085_s22, %s5825_s22   ;;  %s4797_s18 = sphi %s5083_s18, %s5824_s18   ;;  %s4793_s16 = sphi %s5081_s16, %s5823_s16   ;;  %s4789_s15 = sphi %s5079_s15, %s5822_s15  }
  0x5c   : > { %s5770_s13 = sld [smem:[#allocation7_spill]]  ;;  %s5771_s12 = sld [smem:[#allocation14_spill]] }
  0x5d   : > { %s5772_s9 = sld [smem:[#allocation6_spill]]  ;;  %s5773_s8 = sld [smem:[#allocation11_spill]] }
  0x5e   : > { %s5774_s6 = sld [smem:[#allocation13_spill]]  ;;  %s5775_s3 = sld [smem:[#allocation10_spill]] }
  0x5f   : > { %s5100_s0 = sadd.s32 4294967295, %s4801_s22   ;;  %s3630_s23 = sadd.s32 4294967294, %s4801_s22  }
  0x60   : > { %s5104_s26 = sadd.s32 1, %s4801_s22   ;;  %s998_s28 = sadd.s32 1, %s4797_s18 }
  0x61   : > { %s995_s1 = ssub.s32 %s4801_s22, %s5104_s26  ;;  %p1008_p0 = scmp.ne.s32.totalorder %s4797_s18, %s4793_s16 }
  0x62   : > { %p996_p1 = scmp.eq.s32.totalorder %s995_s1, 0  ;;  %p1009_p2 = scmp.eq.s32.totalorder %s5100_s0, 1 }
  0x63   : > { %p1014_p3 = scmp.ne.s32.totalorder %s4793_s16, %s4789_s15  ;;  %p1015_p4 = scmp.eq.s32.totalorder %s3630_s23, 1 }
  0x64   : > { %s5115_s2 = scalar_select %p996_p1, %s4797_s18, %s998_s28  }
  0x65   : > { %p5117_p5 = por %p1009_p2, %p1008_p0  ;;  %p5121_p6 = por %p1015_p4, %p1014_p3 }
  0x66   : > { %p3633_p7 = scmp.ge.s32.totalorder %s4801_s22, 1  ;;  %p1160_p8 = scmp.lt.s32.totalorder %s4801_s22, 3 }
  0x68   : > { %p1161_p9 = pnand %p3633_p7, %p1160_p8 }
  0x69   : > { %s5778_s5 = sld [smem:[#allocation5_spill]] (!%p1161_p9)  ;;  %p1265_p10 = scmp.lt.s32.totalorder (!%p1161_p9), %s5100_s0, 1  ;;  %v1276_v0 = vld [vmem:[%s5772_s9] sm:$0xff] (!%p1161_p9)  ;;  %vm1304_vm0 = vcmask (!%p1161_p9), 64512   ;;  %v4845_v1 = vmov (!%p1161_p9), 0   ;;  %v1529_v4 = vld [vmem:[%s4892_s25 + $0x8] sm:$0xff] (!%p1161_p9) }
  0x6a   : > { %1164 = sbr.rel (%p1161_p9) target bundleno = 3891 (0xf33), region = 184  ;;  %3908 = vmatprep.mubr.msk.f32.mxu1 (!%p1161_p9), %vm1304_vm0, %v1276_v0  ;;  %4574 = vset.pattern.permute.xlu1 (!%p1161_p9), %v4845_v1  ;;  %v1528_v2 = vld [vmem:[%s4892_s25] sm:$0xff] (!%p1161_p9)  ;;  %v1281_v5 = vld [vmem:[%s5770_s13 + $0x8] sm:$0xff] (!%p1161_p9)  ;;  %v1278_v8 = vld [vmem:[%s5772_s9 + $0x10] sm:$0xff] (!%p1161_p9)  ;;  %vm1430_vm1 = vcmask (!%p1161_p9), 261120   ;;  %s5693_s1 = smov (!%p1161_p9), 1  }
  0x6b   : > { %v1280_v3 = vld [vmem:[%s5770_s13] sm:$0xff] (!%p1161_p9)  ;;  %4573 = vset.pattern.permute.xlu0 (!%p1161_p9), %v4845_v1  ;;  %1534 = vperm.xlu1 (!%p1161_p9), %4574, %v1528_v2   ;;  %v1277_v7 = vld [vmem:[%s5772_s9 + $0x8] sm:$0xff] (!%p1161_p9)  ;;  %v1283_v9 = vld [vmem:[%s5770_s13 + $0x18] sm:$0xff] (!%p1161_p9)  ;;  %vm1646_vm2 = vcmask (!%p1161_p9), 785408   ;;  %vm4853_vm15 = vmmov (!%p1161_p9), 0  }
  0x6c   : > { %1286 = vperm.xlu0 (!%p1161_p9), %4573, %v1280_v3   ;;  %v1282_v10 = vld [vmem:[%s5770_s13 + $0x10] sm:$0xff] (!%p1161_p9)  ;;  %v1279_v11 = vld [vmem:[%s5772_s9 + $0x18] sm:$0xff] (!%p1161_p9)  ;;  %v1557_v12 = vld [vmem:[%s4897_s29 + $0x8] sm:$0xff] (!%p1161_p9)  ;;  %s5792_s9 = sld [smem:[#allocation22_spill]] (!%p1161_p9)  ;;  %s4856_s13 = smov (!%p1161_p9), [#allocation2]  }
  0x6d   : > { %v1556_v13 = vld [vmem:[%s4897_s29] sm:$0xff] (!%p1161_p9)  ;;  %v1531_v14 = vld [vmem:[%s4892_s25 + $0x18] sm:$0xff] (!%p1161_p9)  ;;  %v1530_v15 = vld [vmem:[%s4892_s25 + $0x10] sm:$0xff] (!%p1161_p9) }
  0x6e   : > { %v1559_v16 = vld [vmem:[%s4897_s29 + $0x18] sm:$0xff] (!%p1161_p9)  ;;  %v1558_v17 = vld [vmem:[%s4897_s29 + $0x10] sm:$0xff] (!%p1161_p9)  ;;  %v1402_v29 = vld [vmem:[%s5768_s17] sm:$0xff] (!%p1161_p9) }
  0x6f   : > { %1539 = vperm.xlu1 (!%p1161_p9), %4574, %v1529_v4   ;;  %3922 = vmatprep.mubr.msk.f32.mxu0 (!%p1161_p9), %vm1430_vm1, %v1402_v29  ;;  %v1403_v54 = vld [vmem:[%s5768_s17 + $0x8] sm:$0xff] (!%p1161_p9)  ;;  %v1592_v58 = vld [vmem:[%s5773_s8] sm:$0xff] (!%p1161_p9)  ;;  %v1404_v59 = vld [vmem:[%s5768_s17 + $0x10] sm:$0xff] (!%p1161_p9) }
  0x70   : > { %1291 = vperm.xlu0 (!%p1161_p9), %4573, %v1281_v5   ;;  %v1593_v60 = vld [vmem:[%s5773_s8 + $0x8] sm:$0xff] (!%p1161_p9)  ;;  %v1744_v61 = vld [vmem:[%s5769_s14] sm:$0xff] (!%p1161_p9)  ;;  %v1405_v62 = vld [vmem:[%s5768_s17 + $0x18] sm:$0xff] (!%p1161_p9) }
  0x71   : > { %s5133_s11 = scalar_select %p1265_p10, %s5100_s0, 1  ;;  %v1588_v63 = vld [vmem:[%s5775_s3] sm:$0xff]  ;;  %v1745_v0 = vld [vmem:[%s5769_s14 + $0x8] sm:$0xff]  ;;  %v1594_v1 = vld [vmem:[%s5773_s8 + $0x10] sm:$0xff] }
  0x72   : > { %v1595_v2 = vld [vmem:[%s5773_s8 + $0x18] sm:$0xff]  ;;  %v1772_v3 = vld [vmem:[%s4917_s19] sm:$0xff]  ;;  %v1773_v4 = vld [vmem:[%s4917_s19 + $0x8] sm:$0xff]  ;;  %s5791_s8 = sld [smem:[#allocation21_spill]] }
  0x73   : > { %s3635_s23 = sshll.u32 %s5133_s11, 3  ;;  %1301 = vperm.xlu1 %4574, %v1283_v9   ;;  %v1746_v5 = vld [vmem:[%s5769_s14 + $0x10] sm:$0xff]  ;;  %v1274_v9 = vlaneseq }
  0x74   : > { %s1268_s28 = scalar_lea.vmem %s5778_s5, %s3635_s23  ;;  %1296 = vperm.xlu0 %4573, %v1282_v10   ;;  %s5691_s23 = smov 127  }
  0x75   : > { %v1273_v6 = vld [vmem:[%s1268_s28] sm:$0xff]  ;;  %v5199_v10 = vand.u32 127, %v1274_v9  ;;  %s5783_s28 = sld [smem:[#allocation16_spill]]  ;;  %s5787_s5 = smov 127  }
  0x76   : > { %3906 = vmatprep.subr.mxu1 %v1273_v6 }
  0x77   : > { %3907 = vmatpush3.msra.mxu1 %v1273_v6  ;;  %1567 = vperm.xlu1 %4574, %v1557_v12   ;;  %v1747_v6 = vld [vmem:[%s5769_s14 + $0x18] sm:$0xff]  ;;  %vm1604_vm3 = vcmp.ge.s32.totalorder %v5199_v10, 1  ;;  %vm1620_vm5 = vcmp.lt.s32.totalorder %v5199_v10, 127  ;;  %vm2455_vm7 = vcmp.ge.s32.totalorder %v5199_v10, 2  ;;  %vm2471_vm9 = vcmp.lt.s32.totalorder %v5199_v10, 126  ;;  %s4743_s14 = sshll.u32 %s4856_s13, 4  ;;  %s4744_s14 = int_to_ptr.vmem [resolvable:$false] %s4743_s14 }
  0x78   : > { %3909 = vmatmul.mubr.msk.f32.vlgmr.msra.gmra.mrb[0].mxu1 %vm1304_vm0, %v1277_v7  ;;  %1562 = vperm.xlu0 %4573, %v1556_v13   ;;  %v1774_v7 = vld [vmem:[%s4917_s19 + $0x10] sm:$0xff]  ;;  %vm5202_vm4 = vmpackc.low %vm1604_vm3, %vm1604_vm3  ;;  %vm2883_vm11 = vcmp.ge.s32.totalorder %v5199_v10, 4  ;;  %vm2899_vm13 = vcmp.lt.s32.totalorder %v5199_v10, 124  ;;  %s4745_s17 = scalar_lea.vmem %s4744_s14, 1024 }
  0x79   : > { %3911 = vmatprep.mubr.msk.f32.mxu1 %vm1304_vm0, %v1278_v8  ;;  %v1775_v8 = vld [vmem:[%s4917_s19 + $0x18] sm:$0xff]  ;;  %vm5218_vm6 = vmpackc.low %vm1620_vm5, %vm1620_vm5 }
  0x7a   : > { %vm5416_vm8 = vmpackc.low %vm2455_vm7, %vm2455_vm7 }
  0x7b   : > { %1549 = vperm.xlu1 %4574, %v1531_v14   ;;  %vm5429_vm10 = vmpackc.low %vm2471_vm9, %vm2471_vm9 }
  0x7c   : > { %3912 = vmatmul.mubr.msk.f32.gmra.mrb[2].mxu1 %vm1304_vm0, %v1279_v11  ;;  %1544 = vperm.xlu0 %4573, %v1530_v15   ;;  %vm5522_vm12 = vmpackc.low %vm2883_vm11, %vm2883_vm11 }
  0x7d   : > { %vm5535_vm14 = vmpackc.low %vm2899_vm13, %vm2899_vm13 }
  0x7f   : > { %1577 = vperm.xlu1 %4574, %v1559_v16  }
  0x80   : > { %1572 = vperm.xlu0 %4573, %v1558_v17  }
  0xea   : > { %v1535_v18 = vpop.permute.xlu1 %1534 }
  0xeb   : > { %v1287_v19 = vpop.permute.xlu0 %1286 }
  0xee   : > { %v1540_v20 = vpop.permute.xlu1 %1539 }
  0xef   : > { %v1292_v21 = vpop.permute.xlu0 %1291 }
  0xf2   : > { %v1302_v22 = vpop.permute.xlu1 %1301 }
  0xf3   : > { %v1297_v23 = vpop.permute.xlu0 %1296 }
  0xf6   : > { %v1568_v24 = vpop.permute.xlu1 %1567 }
  0xf7   : > { %v1563_v25 = vpop.permute.xlu0 %1562 }
  0xfa   : > { %v1550_v30 = vpop.permute.xlu1 %1549 }
  0xfb   : > { %v1545_v32 = vpop.permute.xlu0 %1544 }
  0xfe   : > { %v1578_v44 = vpop.permute.xlu1 %1577 }
  0xff   : > { %v1573_v48 = vpop.permute.xlu0 %1572 }
 0x14b   : > { %v3910_v26 = vpop.f32.mrb[0].mxu1 }
 0x14c   : > { %v5153_v27 = vadd.f32 %v3910_v26, %v1292_v21  ;;  %v1383_v28 = vpop.f32.mrb[1].mxu1 }
 0x14d   : > { %v5156_v31 = vadd.f32 %v1383_v28, %v1287_v19 }
 0x14e   : > { %v1553_v33 = vmul.f32 %v1540_v20, %v5153_v27 }
 0x14f   : > { %v1552_v34 = vmul.f32 %v1535_v18, %v5156_v31  ;;  %v3913_v35 = vpop.f32.mrb[2].mxu1  ;;  %v4193_v36 = vpack.c.bf16 %v5153_v27, %v5156_v31 }
 0x150   : > { %v1581_v37 = vadd.f32 %v1568_v24, %v1553_v33  ;;  %v5163_v38 = vadd.f32 %v3913_v35, %v1302_v22  ;;  %v1393_v39 = vpop.f32.mrb[3].mxu1  ;;  %v1591_v33 = vld [vmem:[%s5775_s3 + $0x18] sm:$0xff] }
 0x151   : > { %v1580_v40 = vadd.f32 %v1563_v25, %v1552_v34  ;;  %v5165_v41 = vadd.f32 %v1393_v39, %v1297_v23  ;;  %4194 = vmatprep.subr.bf16.mxu0 %v4193_v36 }
 0x152   : > { %v1585_v42 = vmax.f32 %v1581_v37, 0.0  ;;  %v1555_v43 = vmul.f32 %v1550_v30, %v5163_v38  ;;  %4196 = vmatpush3.bf16.msra.mxu0 %v4193_v36  ;;  %v1589_v30 = vld [vmem:[%s5775_s3 + $0x8] sm:$0xff] }
 0x153   : > { %v1584_v45 = vmax.f32 %v1580_v40, 0.0  ;;  %v1554_v46 = vmul.f32 %v1545_v32, %v5165_v41  ;;  %v4197_v47 = vpack.c.bf16 %v5163_v38, %v5165_v41  ;;  %v1590_v32 = vld [vmem:[%s5775_s3 + $0x10] sm:$0xff]  ;;  %s5786_s3 = smov 1  }
 0x154   : > { %v1583_v49 = vadd.f32 %v1578_v44, %v1555_v43 }
 0x155   : > { %v1582_v50 = vadd.f32 %v1573_v48, %v1554_v46  ;;  %4198 = vmatprep.subr.bf16.mxu0 %v4197_v47  ;;  %v4575_v51 = vpack.i.bf16 %v1585_v42, %v1584_v45  ;;  %v5171_v52 = vpack.c.bf16 %v1585_v42, %v1584_v45 }
 0x156   : > { %v1587_v53 = vmax.f32 %v1583_v49, 0.0  ;;  %4200 = vmatpush3.bf16.msra.mxu0 %v4197_v47 }
 0x157   : > { %v1586_v55 = vmax.f32 %v1582_v50, 0.0  ;;  %4576 = vrot.lane.b32.xlu0 %v4575_v51, %s5693_s1 }
 0x159   : > { %v4580_v56 = vpack.i.bf16 %v1587_v53, %v1586_v55  ;;  %3923 = vmatmul.mubr.msk.f32.vlgmr.msra.gmra.mrb[0].mxu0 %vm1430_vm1, %v1403_v54  ;;  %v5176_v57 = vpack.c.bf16 %v1587_v53, %v1586_v55 }
 0x15a   : > { %3925 = vmatprep.mubr.msk.f32.mxu0 %vm1430_vm1, %v1404_v59 }
 0x15b   : > { %4581 = vrot.lane.b32.xlu1 %v4580_v56, %s5693_s1  ;;  %4586 = vrot.lane.b32.xlu0 %v4575_v51, %s5691_s23 }
 0x15d   : > { %3926 = vmatmul.mubr.msk.f32.gmra.mrb[2].mxu0 %vm1430_vm1, %v1405_v62 }
 0x15e   : > { %3952 = vmatprep.mubr.msk.f32.mxu0 %vm1646_vm2, %v1588_v63 }
 0x15f   : > { %4591 = vrot.lane.b32.xlu1 %v4580_v56, %s5691_s23  ;;  %1628 = vperm.xlu0 %4573, %v1592_v58  }
 0x163   : > { %1633 = vperm.xlu1 %4574, %v1593_v60   ;;  %1750 = vperm.xlu0 %4573, %v1744_v61  }
 0x167   : > { %1755 = vperm.xlu1 %4574, %v1745_v0   ;;  %1638 = vperm.xlu0 %4573, %v1594_v1  }
 0x16b   : > { %1643 = vperm.xlu1 %4574, %v1595_v2   ;;  %1778 = vperm.xlu0 %4573, %v1772_v3  }
 0x16f   : > { %1783 = vperm.xlu1 %4574, %v1773_v4   ;;  %1760 = vperm.xlu0 %4573, %v1746_v5  }
 0x173   : > { %1765 = vperm.xlu1 %4574, %v1747_v6   ;;  %1788 = vperm.xlu0 %4573, %v1774_v7  }
 0x177   : > { %1793 = vperm.xlu1 %4574, %v1775_v8  }
 0x1c9   : > { %v4577_v11 = vpop.permute.xlu0 %4576 }
 0x1ca   : > { %v4579_v12 = vunpack.i.h.bf16 %v4577_v11  ;;  %v4578_v13 = vunpack.i.l.bf16 %v4577_v11 }
 0x1cc   : > { %v4201_v15 = vpack.c.bf16 %v4579_v12, %v4578_v13  ;;  %v1808_v13 = vld [vmem:[%s4927_s30] sm:$0xff] }
 0x1cd   : > { %v4582_v16 = vpop.permute.xlu1 %4581  ;;  %v4587_v20 = vpop.permute.xlu0 %4586 }
 0x1ce   : > { %v4584_v17 = vunpack.i.h.bf16 %v4582_v16  ;;  %v4583_v18 = vunpack.i.l.bf16 %v4582_v16  ;;  %4203 = vmatprep.subr.msk.bf16.mxu0 %vm5202_vm4, %v4201_v15  ;;  %v4589_v21 = vunpack.i.h.bf16 %v4587_v20  ;;  %v4588_v22 = vunpack.i.l.bf16 %v4587_v20  ;;  %v1810_v16 = vld [vmem:[%s4927_s30 + $0x10] sm:$0xff]  ;;  %v1958_v20 = vld [vmem:[%s5774_s6 + $0x8] sm:$0xff] }
 0x1cf   : > { %4206 = vmatpush3.bf16.msk.msra.mxu0 %vm5202_vm4, %v4201_v15  ;;  %v1809_v15 = vld [vmem:[%s4927_s30 + $0x8] sm:$0xff] }
 0x1d0   : > { %v4207_v19 = vpack.c.bf16 %v4584_v17, %v4583_v18  ;;  %v4221_v25 = vpack.c.bf16 %v4589_v21, %v4588_v22  ;;  %v1804_v17 = vld [vmem:[%s4922_s24] sm:$0xff]  ;;  %v1811_v18 = vld [vmem:[%s4927_s30 + $0x18] sm:$0xff]  ;;  %v1986_v22 = vld [vmem:[%s5771_s12 + $0x8] sm:$0xff] }
 0x1d1   : > { %v4592_v23 = vpop.permute.xlu1 %4591  ;;  %3982 = vmatprep.mubr.msk.f32.mxu1 %vm1646_vm2, %v1804_v17  ;;  %v1985_v21 = vld [vmem:[%s5771_s12] sm:$0xff] }
 0x1d2   : > { %4209 = vmatprep.subr.msk.bf16.mxu0 %vm5202_vm4, %v4207_v19  ;;  %v4594_v26 = vunpack.i.h.bf16 %v4592_v23  ;;  %v4593_v28 = vunpack.i.l.bf16 %v4592_v23  ;;  %v1959_v23 = vld [vmem:[%s5774_s6 + $0x10] sm:$0xff] }
 0x1d3   : > { %4212 = vmatpush3.bf16.msk.msra.mxu0 %vm5202_vm4, %v4207_v19  ;;  %v1957_v19 = vld [vmem:[%s5774_s6] sm:$0xff] }
 0x1d4   : > { %4214 = vmatprep.subr.bf16.mxu0 %v5171_v52  ;;  %v4227_v29 = vpack.c.bf16 %v4594_v26, %v4593_v28  ;;  %v1987_v26 = vld [vmem:[%s5771_s12 + $0x10] sm:$0xff]  ;;  %v1988_v28 = vld [vmem:[%s5771_s12 + $0x18] sm:$0xff] }
 0x1d7   : > { %4216 = vmatpush3.bf16.msra.mxu0 %v5171_v52 }
 0x1d8   : > { %4218 = vmatprep.subr.bf16.mxu0 %v5176_v57 }
 0x1db   : > { %4220 = vmatpush3.bf16.msra.mxu0 %v5176_v57 }
 0x1dc   : > { %4223 = vmatprep.subr.msk.bf16.mxu0 %vm5218_vm6, %v4221_v25 }
 0x1de   : > { %v1629_v40 = vpop.permute.xlu0 %1628 }
 0x1df   : > { %4226 = vmatpush3.bf16.msk.msra.mxu0 %vm5218_vm6, %v4221_v25  ;;  %v1960_v25 = vld [vmem:[%s5774_s6 + $0x18] sm:$0xff]  ;;  %s5788_s6 = sld [smem:[#allocation18_spill]] }
 0x1e0   : > { %4229 = vmatprep.subr.msk.bf16.mxu0 %vm5218_vm6, %v4227_v29 }
 0x1e2   : > { %v1634_v39 = vpop.permute.xlu1 %1633  ;;  %v1751_v43 = vpop.permute.xlu0 %1750 }
 0x1e3   : > { %4232 = vmatpush3.bf16.msk.msra.mxu0 %vm5218_vm6, %v4227_v29 }
 0x1e6   : > { %3953 = vmatmul.mubr.msk.f32.vlgmr.msra.gmra.mrb[4].mxu0 %vm1646_vm2, %v1589_v30  ;;  %v1756_v42 = vpop.permute.xlu1 %1755  ;;  %v1639_v45 = vpop.permute.xlu0 %1638 }
 0x1e7   : > { %3955 = vmatprep.mubr.msk.f32.mxu0 %vm1646_vm2, %v1590_v32 }
 0x1ea   : > { %3956 = vmatmul.mubr.msk.f32.gmra.mrb[6].mxu0 %vm1646_vm2, %v1591_v33  ;;  %v1644_v44 = vpop.permute.xlu1 %1643  ;;  %v1779_v47 = vpop.permute.xlu0 %1778 }
 0x1ee   : > { %v1784_v46 = vpop.permute.xlu1 %1783  ;;  %v1761_v53 = vpop.permute.xlu0 %1760 }
 0x1f2   : > { %v1766_v51 = vpop.permute.xlu1 %1765  ;;  %v1789_v3 = vpop.permute.xlu0 %1788 }
 0x1f6   : > { %v1794_v0 = vpop.permute.xlu1 %1793 }
 0x22c   : > { %v5237_v34 = vpop.f32.mrb[0].mxu0 }
 0x22d   : > { %v5239_v35 = vpop.f32.mrb[1].mxu0 }
 0x230   : > { %v5241_v36 = vpop.f32.mrb[2].mxu0 }
 0x231   : > { %v5243_v37 = vpop.f32.mrb[3].mxu0 }
 0x2b9   : > { %v3954_v48 = vpop.f32.mrb[4].mxu0 }
 0x2ba   : > { %v1731_v49 = vadd.f32 %v3954_v48, %v1634_v39  ;;  %v1725_v50 = vpop.f32.mrb[5].mxu0 }
 0x2bb   : > { %v1726_v52 = vadd.f32 %v1725_v50, %v1629_v40 }
 0x2bc   : > { %v1769_v54 = vmul.f32 %v1756_v42, %v1731_v49 }
 0x2bd   : > { %v1768_v55 = vmul.f32 %v1751_v43, %v1726_v52  ;;  %v3957_v56 = vpop.f32.mrb[6].mxu0  ;;  %v1805_v52 = vld [vmem:[%s4922_s24 + $0x8] sm:$0xff] }
 0x2be   : > { %v1797_v57 = vadd.f32 %v1784_v46, %v1769_v54  ;;  %v1741_v58 = vadd.f32 %v3957_v56, %v1644_v44  ;;  %v1735_v59 = vpop.f32.mrb[7].mxu0  ;;  %v1807_v54 = vld [vmem:[%s4922_s24 + $0x18] sm:$0xff] }
 0x2bf   : > { %v1796_v60 = vadd.f32 %v1779_v47, %v1768_v55  ;;  %v1736_v61 = vadd.f32 %v1735_v59, %v1639_v45 }
 0x2c0   : > { %v1801_v62 = vmax.f32 %v1797_v57, 0.0  ;;  %v1771_v63 = vmul.f32 %v1766_v51, %v1741_v58 }
 0x2c1   : > { %v1800_v1 = vmax.f32 %v1796_v60, 0.0  ;;  %v1770_v2 = vmul.f32 %v1761_v53, %v1736_v61  ;;  %v1806_v53 = vld [vmem:[%s4922_s24 + $0x10] sm:$0xff] }
 0x2c2   : > { %v1799_v4 = vadd.f32 %v1794_v0, %v1771_v63 }
 0x2c3   : > { %v1798_v5 = vadd.f32 %v1789_v3, %v1770_v2  ;;  %v4595_v6 = vpack.i.bf16 %v1801_v62, %v1800_v1  ;;  %v4245_v7 = vpack.c.bf16 %v1801_v62, %v1800_v1 }
 0x2c4   : > { %v1803_v8 = vmax.f32 %v1799_v4, 0.0 }
 0x2c5   : > { %v1802_v9 = vmax.f32 %v1798_v5, 0.0  ;;  %4596 = vrot.lane.b32.xlu0 %v4595_v6, %s5693_s1 }
 0x2c7   : > { %v4600_v11 = vpack.i.bf16 %v1803_v8, %v1802_v9  ;;  %v4249_v12 = vpack.c.bf16 %v1803_v8, %v1802_v9 }
 0x2c9   : > { %4601 = vrot.lane.b32.xlu1 %v4600_v11, %s5693_s1  ;;  %4606 = vrot.lane.b32.xlu0 %v4595_v6, %s5691_s23  ;;  %s5785_s1 = sld [smem:[#allocation15_spill]] }
 0x2cd   : > { %4611 = vrot.lane.b32.xlu1 %v4600_v11, %s5691_s23  ;;  %1838 = vperm.xlu0 %4573, %v1808_v13   ;;  %s5784_s23 = sld [smem:[#allocation17_spill]] }
 0x2d1   : > { %1843 = vperm.xlu1 %4574, %v1809_v15   ;;  %1848 = vperm.xlu0 %4573, %v1810_v16  }
 0x2d5   : > { %1853 = vperm.xlu1 %4574, %v1811_v18   ;;  %1963 = vperm.xlu0 %4573, %v1957_v19  }
 0x2d9   : > { %1968 = vperm.xlu1 %4574, %v1958_v20   ;;  %1991 = vperm.xlu0 %4573, %v1985_v21  }
 0x2dd   : > { %1996 = vperm.xlu1 %4574, %v1986_v22   ;;  %1973 = vperm.xlu0 %4573, %v1959_v23  }
 0x2e1   : > { %1978 = vperm.xlu1 %4574, %v1960_v25   ;;  %2001 = vperm.xlu0 %4573, %v1987_v26  }
 0x2e5   : > { %2006 = vperm.xlu1 %4574, %v1988_v28  }
 0x337   : > { %v4597_v29 = vpop.permute.xlu0 %4596 }
 0x338   : > { %v4599_v30 = vunpack.i.h.bf16 %v4597_v29  ;;  %v4598_v32 = vunpack.i.l.bf16 %v4597_v29 }
 0x33a   : > { %v4233_v33 = vpack.c.bf16 %v4599_v30, %v4598_v32  ;;  %v2021_v32 = vld [vmem:[%s5783_s28] sm:$0xff] }
 0x33b   : > { %v4602_v39 = vpop.permute.xlu1 %4601  ;;  %v4607_v44 = vpop.permute.xlu0 %4606 }
 0x33c   : > { %v4604_v40 = vunpack.i.h.bf16 %v4602_v39  ;;  %v4603_v42 = vunpack.i.l.bf16 %v4602_v39  ;;  %4235 = vmatprep.subr.msk.bf16.mxu1 %vm5202_vm4, %v4233_v33  ;;  %v4609_v45 = vunpack.i.h.bf16 %v4607_v44  ;;  %v4608_v46 = vunpack.i.l.bf16 %v4607_v44  ;;  %v2166_v39 = vld [vmem:[%s5784_s23] sm:$0xff]  ;;  %v2024_v44 = vld [vmem:[%s5783_s28 + $0x18] sm:$0xff] }
 0x33d   : > { %4238 = vmatpush3.bf16.msk.msra.mxu1 %vm5202_vm4, %v4233_v33  ;;  %v2022_v33 = vld [vmem:[%s5783_s28 + $0x8] sm:$0xff] }
 0x33e   : > { %v4239_v43 = vpack.c.bf16 %v4604_v40, %v4603_v42  ;;  %v4253_v48 = vpack.c.bf16 %v4609_v45, %v4608_v46  ;;  %v2017_v40 = vld [vmem:[%s5785_s1] sm:$0xff]  ;;  %v2167_v42 = vld [vmem:[%s5784_s23 + $0x8] sm:$0xff] }
 0x33f   : > { %v4612_v47 = vpop.permute.xlu1 %4611  ;;  %4012 = vmatprep.mubr.msk.f32.mxu0 %vm1646_vm2, %v2017_v40  ;;  %v2194_v45 = vld [vmem:[%s5788_s6] sm:$0xff]  ;;  %v2195_v46 = vld [vmem:[%s5788_s6 + $0x8] sm:$0xff] }
 0x340   : > { %4241 = vmatprep.subr.msk.bf16.mxu1 %vm5202_vm4, %v4239_v43  ;;  %v4614_v49 = vunpack.i.h.bf16 %v4612_v47  ;;  %v4613_v50 = vunpack.i.l.bf16 %v4612_v47  ;;  %v2168_v47 = vld [vmem:[%s5784_s23 + $0x10] sm:$0xff] }
 0x341   : > { %4244 = vmatpush3.bf16.msk.msra.mxu1 %vm5202_vm4, %v4239_v43  ;;  %v2023_v43 = vld [vmem:[%s5783_s28 + $0x10] sm:$0xff] }
 0x342   : > { %4246 = vmatprep.subr.bf16.mxu1 %v4245_v7  ;;  %v4259_v51 = vpack.c.bf16 %v4614_v49, %v4613_v50  ;;  %v2196_v49 = vld [vmem:[%s5788_s6 + $0x10] sm:$0xff]  ;;  %v2197_v50 = vld [vmem:[%s5788_s6 + $0x18] sm:$0xff]  ;;  %s5790_s6 = sld [smem:[#allocation19_spill]] }
 0x345   : > { %4248 = vmatpush3.bf16.msra.mxu1 %v4245_v7 }
 0x346   : > { %4250 = vmatprep.subr.bf16.mxu1 %v4249_v12 }
 0x348   : > { %v2227_v14 = vld [vmem:[%s5790_s6 + $0x8] sm:$0xff] }
 0x349   : > { %4252 = vmatpush3.bf16.msra.mxu1 %v4249_v12 }
 0x34a   : > { %4255 = vmatprep.subr.msk.bf16.mxu1 %vm5218_vm6, %v4253_v48 }
 0x34c   : > { %v1839_v56 = vpop.permute.xlu0 %1838 }
 0x34d   : > { %4258 = vmatpush3.bf16.msk.msra.mxu1 %vm5218_vm6, %v4253_v48  ;;  %v2169_v48 = vld [vmem:[%s5784_s23 + $0x18] sm:$0xff] }
 0x34e   : > { %4261 = vmatprep.subr.msk.bf16.mxu1 %vm5218_vm6, %v4259_v51 }
 0x350   : > { %v1844_v55 = vpop.permute.xlu1 %1843  ;;  %v1849_v58 = vpop.permute.xlu0 %1848 }
 0x351   : > { %4264 = vmatpush3.bf16.msk.msra.mxu1 %vm5218_vm6, %v4259_v51 }
 0x354   : > { %3983 = vmatmul.mubr.msk.f32.vlgmr.msra.gmra.mrb[4].mxu1 %vm1646_vm2, %v1805_v52  ;;  %v1854_v57 = vpop.permute.xlu1 %1853  ;;  %v1964_v60 = vpop.permute.xlu0 %1963 }
 0x355   : > { %3985 = vmatprep.mubr.msk.f32.mxu1 %vm1646_vm2, %v1806_v53 }
 0x358   : > { %3986 = vmatmul.mubr.msk.f32.gmra.mrb[6].mxu1 %vm1646_vm2, %v1807_v54  ;;  %v1969_v59 = vpop.permute.xlu1 %1968  ;;  %v1992_v62 = vpop.permute.xlu0 %1991 }
 0x35c   : > { %v1997_v61 = vpop.permute.xlu1 %1996  ;;  %v1974_v7 = vpop.permute.xlu0 %1973 }
 0x360   : > { %v1979_v4 = vpop.permute.xlu1 %1978  ;;  %v2002_v22 = vpop.permute.xlu0 %2001 }
 0x364   : > { %v2007_v19 = vpop.permute.xlu1 %2006 }
 0x427   : > { %v3984_v63 = vpop.f32.mrb[4].mxu1 }
 0x428   : > { %v1940_v0 = vadd.f32 %v3984_v63, %v1844_v55  ;;  %v1934_v1 = vpop.f32.mrb[5].mxu1 }
 0x429   : > { %v1935_v2 = vadd.f32 %v1934_v1, %v1839_v56 }
 0x42a   : > { %v5286_v3 = vadd.f32 %v1940_v0, %v5153_v27 }
 0x42b   : > { %v5289_v5 = vadd.f32 %v1935_v2, %v5156_v31  ;;  %v3987_v6 = vpop.f32.mrb[6].mxu1 }
 0x42c   : > { %v1982_v8 = vmul.f32 %v1969_v59, %v5286_v3  ;;  %v1950_v9 = vadd.f32 %v3987_v6, %v1854_v57  ;;  %v1944_v11 = vpop.f32.mrb[7].mxu1  ;;  %v2019_v6 = vld [vmem:[%s5785_s1 + $0x10] sm:$0xff] }
 0x42d   : > { %v1981_v12 = vmul.f32 %v1964_v60, %v5289_v5  ;;  %v1945_v13 = vadd.f32 %v1944_v11, %v1849_v58 }
 0x42e   : > { %v2010_v15 = vadd.f32 %v1997_v61, %v1982_v8  ;;  %v5294_v16 = vadd.f32 %v1950_v9, %v5163_v38 }
 0x42f   : > { %v2009_v17 = vadd.f32 %v1992_v62, %v1981_v12  ;;  %v5297_v27 = vadd.f32 %v1945_v13, %v5165_v41 }
 0x430   : > { %v2014_v18 = vmax.f32 %v2010_v15, 0.0  ;;  %v1984_v31 = vmul.f32 %v1979_v4, %v5294_v16  ;;  %v2018_v4 = vld [vmem:[%s5785_s1 + $0x8] sm:$0xff] }
 0x431   : > { %v2013_v20 = vmax.f32 %v2009_v17, 0.0  ;;  %v1983_v21 = vmul.f32 %v1974_v7, %v5297_v27  ;;  %v2020_v7 = vld [vmem:[%s5785_s1 + $0x18] sm:$0xff]  ;;  %s5789_s1 = sld [smem:[#allocation20_spill]] }
 0x432   : > { %v2012_v23 = vadd.f32 %v2007_v19, %v1984_v31 }
 0x433   : > { %v2011_v25 = vadd.f32 %v2002_v22, %v1983_v21  ;;  %v4615_v26 = vpack.i.bf16 %v2014_v18, %v2013_v20  ;;  %v4277_v38 = vpack.c.bf16 %v2014_v18, %v2013_v20 }
 0x434   : > { %v2016_v28 = vmax.f32 %v2012_v23, 0.0 }
 0x435   : > { %v2015_v41 = vmax.f32 %v2011_v25, 0.0  ;;  %4616 = vrot.lane.b32.xlu0 %v4615_v26, %s5786_s3 }
 0x437   : > { %v4620_v29 = vpack.i.bf16 %v2016_v28, %v2015_v41  ;;  %v4281_v30 = vpack.c.bf16 %v2016_v28, %v2015_v41 }
 0x439   : > { %4621 = vrot.lane.b32.xlu1 %v4620_v29, %s5786_s3  ;;  %4626 = vrot.lane.b32.xlu0 %v4615_v26, %s5787_s5 }
 0x43d   : > { %4631 = vrot.lane.b32.xlu1 %v4620_v29, %s5787_s5  ;;  %2051 = vperm.xlu0 %4573, %v2021_v32  }
 0x441   : > { %2056 = vperm.xlu1 %4574, %v2022_v33   ;;  %2172 = vperm.xlu0 %4573, %v2166_v39  }
 0x445   : > { %2177 = vperm.xlu1 %4574, %v2167_v42   ;;  %2061 = vperm.xlu0 %4573, %v2023_v43  }
 0x449   : > { %2066 = vperm.xlu1 %4574, %v2024_v44   ;;  %2200 = vperm.xlu0 %4573, %v2194_v45  }
 0x44d   : > { %2205 = vperm.xlu1 %4574, %v2195_v46   ;;  %2182 = vperm.xlu0 %4573, %v2168_v47  }
 0x451   : > { %2187 = vperm.xlu1 %4574, %v2169_v48   ;;  %2210 = vperm.xlu0 %4573, %v2196_v49  }
 0x455   : > { %2215 = vperm.xlu1 %4574, %v2197_v50  }
 0x4a7   : > { %v4617_v51 = vpop.permute.xlu0 %4616 }
 0x4a8   : > { %v4619_v52 = vunpack.i.h.bf16 %v4617_v51  ;;  %v4618_v53 = vunpack.i.l.bf16 %v4617_v51 }
 0x4aa   : > { %v4265_v54 = vpack.c.bf16 %v4619_v52, %v4618_v53  ;;  %v2230_v53 = vld [vmem:[%s5789_s1] sm:$0xff] }
 0x4ab   : > { %v4622_v55 = vpop.permute.xlu1 %4621  ;;  %v4627_v59 = vpop.permute.xlu0 %4626 }
 0x4ac   : > { %v4624_v56 = vunpack.i.h.bf16 %v4622_v55  ;;  %v4623_v57 = vunpack.i.l.bf16 %v4622_v55  ;;  %4267 = vmatprep.subr.msk.bf16.mxu0 %vm5202_vm4, %v4265_v54  ;;  %v4629_v60 = vunpack.i.h.bf16 %v4627_v59  ;;  %v4628_v61 = vunpack.i.l.bf16 %v4627_v59  ;;  %v2232_v55 = vld [vmem:[%s5789_s1 + $0x10] sm:$0xff]  ;;  %v2380_v59 = vld [vmem:[%s5791_s8 + $0x8] sm:$0xff] }
 0x4ad   : > { %4270 = vmatpush3.bf16.msk.msra.mxu0 %vm5202_vm4, %v4265_v54  ;;  %v2231_v54 = vld [vmem:[%s5789_s1 + $0x8] sm:$0xff] }
 0x4ae   : > { %v4271_v58 = vpack.c.bf16 %v4624_v56, %v4623_v57  ;;  %v4285_v63 = vpack.c.bf16 %v4629_v60, %v4628_v61  ;;  %v2226_v56 = vld [vmem:[%s5790_s6] sm:$0xff]  ;;  %v2233_v57 = vld [vmem:[%s5789_s1 + $0x18] sm:$0xff]  ;;  %v2408_v61 = vld [vmem:[%s5792_s9 + $0x8] sm:$0xff]  ;;  %s5795_s1 = sld [smem:[#allocation23_spill]] }
 0x4af   : > { %v4632_v62 = vpop.permute.xlu1 %4631  ;;  %4042 = vmatprep.mubr.msk.f32.mxu1 %vm1646_vm2, %v2226_v56  ;;  %v2407_v60 = vld [vmem:[%s5792_s9] sm:$0xff] }
 0x4b0   : > { %4273 = vmatprep.subr.msk.bf16.mxu0 %vm5202_vm4, %v4271_v58  ;;  %v4634_v0 = vunpack.i.h.bf16 %v4632_v62  ;;  %v4633_v1 = vunpack.i.l.bf16 %v4632_v62  ;;  %v2381_v62 = vld [vmem:[%s5791_s8 + $0x10] sm:$0xff] }
 0x4b1   : > { %4276 = vmatpush3.bf16.msk.msra.mxu0 %vm5202_vm4, %v4271_v58  ;;  %v2379_v58 = vld [vmem:[%s5791_s8] sm:$0xff] }
 0x4b2   : > { %4278 = vmatprep.subr.bf16.mxu0 %v4277_v38  ;;  %v4291_v2 = vpack.c.bf16 %v4634_v0, %v4633_v1  ;;  %v2409_v0 = vld [vmem:[%s5792_s9 + $0x10] sm:$0xff]  ;;  %v2410_v1 = vld [vmem:[%s5792_s9 + $0x18] sm:$0xff]  ;;  %s5796_s9 = sld [smem:[#allocation26_spill]] }
 0x4b5   : > { %4280 = vmatpush3.bf16.msra.mxu0 %v4277_v38 }
 0x4b6   : > { %4282 = vmatprep.subr.bf16.mxu0 %v4281_v30 }
 0x4b9   : > { %4284 = vmatpush3.bf16.msra.mxu0 %v4281_v30 }
 0x4ba   : > { %4287 = vmatprep.subr.msk.bf16.mxu0 %vm5218_vm6, %v4285_v63 }
 0x4bc   : > { %v2052_v9 = vpop.permute.xlu0 %2051 }
 0x4bd   : > { %4290 = vmatpush3.bf16.msk.msra.mxu0 %vm5218_vm6, %v4285_v63  ;;  %v2382_v63 = vld [vmem:[%s5791_s8 + $0x18] sm:$0xff]  ;;  %s5705_s8 = smov 126  }
 0x4be   : > { %4293 = vmatprep.subr.msk.bf16.mxu0 %vm5218_vm6, %v4291_v2 }
 0x4c0   : > { %v2057_v8 = vpop.permute.xlu1 %2056  ;;  %v2173_v12 = vpop.permute.xlu0 %2172 }
 0x4c1   : > { %4296 = vmatpush3.bf16.msk.msra.mxu0 %vm5218_vm6, %v4291_v2 }
 0x4c4   : > { %4013 = vmatmul.mubr.msk.f32.vlgmr.msra.gmra.mrb[8].mxu0 %vm1646_vm2, %v2018_v4  ;;  %v2178_v11 = vpop.permute.xlu1 %2177  ;;  %v2062_v15 = vpop.permute.xlu0 %2061 }
 0x4c5   : > { %4015 = vmatprep.mubr.msk.f32.mxu0 %vm1646_vm2, %v2019_v6 }
 0x4c8   : > { %4016 = vmatmul.mubr.msk.f32.gmra.mrb[10].mxu0 %vm1646_vm2, %v2020_v7  ;;  %v2067_v13 = vpop.permute.xlu1 %2066  ;;  %v2201_v18 = vpop.permute.xlu0 %2200 }
 0x4cc   : > { %v2206_v17 = vpop.permute.xlu1 %2205  ;;  %v2183_v23 = vpop.permute.xlu0 %2182 }
 0x4d0   : > { %v2188_v21 = vpop.permute.xlu1 %2187  ;;  %v2211_v44 = vpop.permute.xlu0 %2210 }
 0x4d4   : > { %v2216_v40 = vpop.permute.xlu1 %2215 }
 0x597   : > { %v4014_v31 = vpop.f32.mrb[8].mxu0 }
 0x598   : > { %v2153_v19 = vadd.f32 %v4014_v31, %v2057_v8  ;;  %v2147_v20 = vpop.f32.mrb[9].mxu0 }
 0x599   : > { %v2148_v22 = vadd.f32 %v2147_v20, %v2052_v9 }
 0x59a   : > { %v2191_v25 = vmul.f32 %v2178_v11, %v2153_v19 }
 0x59b   : > { %v2190_v26 = vmul.f32 %v2173_v12, %v2148_v22  ;;  %v4017_v38 = vpop.f32.mrb[10].mxu0  ;;  %v2228_v22 = vld [vmem:[%s5790_s6 + $0x10] sm:$0xff] }
 0x59c   : > { %v2219_v28 = vadd.f32 %v2206_v17, %v2191_v25  ;;  %v2163_v41 = vadd.f32 %v4017_v38, %v2067_v13  ;;  %v2157_v29 = vpop.f32.mrb[11].mxu0 }
 0x59d   : > { %v2218_v30 = vadd.f32 %v2201_v18, %v2190_v26  ;;  %v2158_v32 = vadd.f32 %v2157_v29, %v2062_v15 }
 0x59e   : > { %v2223_v33 = vmax.f32 %v2219_v28, 0.0  ;;  %v2193_v39 = vmul.f32 %v2188_v21, %v2163_v41 }
 0x59f   : > { %v2222_v42 = vmax.f32 %v2218_v30, 0.0  ;;  %v2192_v43 = vmul.f32 %v2183_v23, %v2158_v32  ;;  %v2229_v23 = vld [vmem:[%s5790_s6 + $0x18] sm:$0xff]  ;;  %s5707_s6 = smov 2  }
 0x5a0   : > { %v2221_v45 = vadd.f32 %v2216_v40, %v2193_v39 }
 0x5a1   : > { %v2220_v46 = vadd.f32 %v2211_v44, %v2192_v43  ;;  %v4635_v47 = vpack.i.bf16 %v2223_v33, %v2222_v42  ;;  %v4309_v48 = vpack.c.bf16 %v2223_v33, %v2222_v42 }
 0x5a2   : > { %v2225_v49 = vmax.f32 %v2221_v45, 0.0 }
 0x5a3   : > { %v2224_v50 = vmax.f32 %v2220_v46, 0.0  ;;  %4636 = vrot.lane.b32.xlu0 %v4635_v47, %s5786_s3 }
 0x5a5   : > { %v4640_v51 = vpack.i.bf16 %v2225_v49, %v2224_v50  ;;  %v4313_v52 = vpack.c.bf16 %v2225_v49, %v2224_v50 }
 0x5a7   : > { %4641 = vrot.lane.b32.xlu1 %v4640_v51, %s5786_s3  ;;  %4646 = vrot.lane.b32.xlu0 %v4635_v47, %s5787_s5  ;;  %s5794_s3 = sld [smem:[#allocation25_spill]] }
 0x5ab   : > { %4651 = vrot.lane.b32.xlu1 %v4640_v51, %s5787_s5  ;;  %2260 = vperm.xlu0 %4573, %v2230_v53   ;;  %s5793_s5 = sld [smem:[#allocation24_spill]] }
 0x5af   : > { %2265 = vperm.xlu1 %4574, %v2231_v54   ;;  %2270 = vperm.xlu0 %4573, %v2232_v55  }
 0x5b3   : > { %2275 = vperm.xlu1 %4574, %v2233_v57   ;;  %2385 = vperm.xlu0 %4573, %v2379_v58  }
 0x5b7   : > { %2390 = vperm.xlu1 %4574, %v2380_v59   ;;  %2413 = vperm.xlu0 %4573, %v2407_v60  }
 0x5bb   : > { %2418 = vperm.xlu1 %4574, %v2408_v61   ;;  %2395 = vperm.xlu0 %4573, %v2381_v62  }
 0x5bf   : > { %2400 = vperm.xlu1 %4574, %v2382_v63   ;;  %2423 = vperm.xlu0 %4573, %v2409_v0  }
 0x5c3   : > { %2428 = vperm.xlu1 %4574, %v2410_v1  }
 0x615   : > { %v4637_v2 = vpop.permute.xlu0 %4636 }
 0x616   : > { %v4639_v4 = vunpack.i.h.bf16 %v4637_v2  ;;  %v4638_v6 = vunpack.i.l.bf16 %v4637_v2  ;;  %v2443_v2 = vld [vmem:[%s5793_s5] sm:$0xff] }
 0x618   : > { %v4297_v7 = vpack.c.bf16 %v4639_v4, %v4638_v6  ;;  %v2444_v4 = vld [vmem:[%s5793_s5 + $0x8] sm:$0xff]  ;;  %v2594_v6 = vld [vmem:[%s5794_s3] sm:$0xff] }
 0x619   : > { %v4642_v8 = vpop.permute.xlu1 %4641  ;;  %v4647_v13 = vpop.permute.xlu0 %4646 }
 0x61a   : > { %v4644_v9 = vunpack.i.h.bf16 %v4642_v8  ;;  %v4643_v11 = vunpack.i.l.bf16 %v4642_v8  ;;  %4299 = vmatprep.subr.msk.bf16.mxu1 %vm5202_vm4, %v4297_v7  ;;  %v4649_v15 = vunpack.i.h.bf16 %v4647_v13  ;;  %v4648_v17 = vunpack.i.l.bf16 %v4647_v13  ;;  %v2595_v8 = vld [vmem:[%s5794_s3 + $0x8] sm:$0xff] }
 0x61b   : > { %4302 = vmatpush3.bf16.msk.msra.mxu1 %vm5202_vm4, %v4297_v7  ;;  %v2439_v7 = vld [vmem:[%s5795_s1] sm:$0xff]  ;;  %v2623_v13 = vld [vmem:[%s5796_s9 + $0x8] sm:$0xff] }
 0x61c   : > { %v4303_v12 = vpack.c.bf16 %v4644_v9, %v4643_v11  ;;  %v4317_v31 = vpack.c.bf16 %v4649_v15, %v4648_v17  ;;  %v2445_v9 = vld [vmem:[%s5793_s5 + $0x10] sm:$0xff]  ;;  %4072 = vmatprep.mubr.msk.f32.mxu0 %vm1646_vm2, %v2439_v7  ;;  %v2446_v11 = vld [vmem:[%s5793_s5 + $0x18] sm:$0xff]  ;;  %s5805_s5 = smov 126  }
 0x61d   : > { %v4652_v18 = vpop.permute.xlu1 %4651  ;;  %v2596_v15 = vld [vmem:[%s5794_s3 + $0x10] sm:$0xff]  ;;  %v2597_v17 = vld [vmem:[%s5794_s3 + $0x18] sm:$0xff]  ;;  %s5804_s3 = smov 2  }
 0x61e   : > { %4305 = vmatprep.subr.msk.bf16.mxu1 %vm5202_vm4, %v4303_v12  ;;  %v4654_v19 = vunpack.i.h.bf16 %v4652_v18  ;;  %v4653_v20 = vunpack.i.l.bf16 %v4652_v18  ;;  %v2624_v18 = vld [vmem:[%s5796_s9 + $0x10] sm:$0xff] }
 0x61f   : > { %4308 = vmatpush3.bf16.msk.msra.mxu1 %vm5202_vm4, %v4303_v12  ;;  %v2622_v12 = vld [vmem:[%s5796_s9] sm:$0xff] }
 0x620   : > { %4310 = vmatprep.subr.bf16.mxu1 %v4309_v48  ;;  %v4323_v21 = vpack.c.bf16 %v4654_v19, %v4653_v20 }
 0x623   : > { %4312 = vmatpush3.bf16.msra.mxu1 %v4309_v48 }
 0x624   : > { %4314 = vmatprep.subr.bf16.mxu1 %v4313_v52 }
 0x627   : > { %4316 = vmatpush3.bf16.msra.mxu1 %v4313_v52 }
 0x628   : > { %4319 = vmatprep.subr.msk.bf16.mxu1 %vm5218_vm6, %v4317_v31 }
 0x62a   : > { %v2261_v26 = vpop.permute.xlu0 %2260 }
 0x62b   : > { %4322 = vmatpush3.bf16.msk.msra.mxu1 %vm5218_vm6, %v4317_v31  ;;  %v2625_v31 = vld [vmem:[%s5796_s9 + $0x18] sm:$0xff]  ;;  %s5806_s9 = sld [smem:[#allocation30_spill]] }
 0x62c   : > { %4325 = vmatprep.subr.msk.bf16.mxu1 %vm5218_vm6, %v4323_v21 }
 0x62e   : > { %v2266_v25 = vpop.permute.xlu1 %2265  ;;  %v2271_v28 = vpop.permute.xlu0 %2270 }
 0x62f   : > { %4328 = vmatpush3.bf16.msk.msra.mxu1 %vm5218_vm6, %v4323_v21 }
 0x632   : > { %4043 = vmatmul.mubr.msk.f32.vlgmr.msra.gmra.mrb[8].mxu1 %vm1646_vm2, %v2227_v14  ;;  %v2276_v38 = vpop.permute.xlu1 %2275  ;;  %v2386_v29 = vpop.permute.xlu0 %2385 }
 0x633   : > { %4045 = vmatprep.mubr.msk.f32.mxu1 %vm1646_vm2, %v2228_v22 }
 0x636   : > { %4046 = vmatmul.mubr.msk.f32.gmra.mrb[10].mxu1 %vm1646_vm2, %v2229_v23  ;;  %v2391_v41 = vpop.permute.xlu1 %2390  ;;  %v2414_v32 = vpop.permute.xlu0 %2413 }
 0x63a   : > { %v2419_v30 = vpop.permute.xlu1 %2418  ;;  %v2396_v46 = vpop.permute.xlu0 %2395 }
 0x63e   : > { %v2401_v43 = vpop.permute.xlu1 %2400  ;;  %v2424_v59 = vpop.permute.xlu0 %2423 }
 0x642   : > { %v2429_v56 = vpop.permute.xlu1 %2428 }
 0x705   : > { %v4044_v33 = vpop.f32.mrb[8].mxu1 }
 0x706   : > { %v2362_v24 = vadd.f32 %v4044_v33, %v2266_v25  ;;  %v2356_v39 = vpop.f32.mrb[9].mxu1 }
 0x707   : > { %v2357_v40 = vadd.f32 %v2356_v39, %v2261_v26 }
 0x708   : > { %v5382_v42 = vadd.f32 %v2362_v24, %v5286_v3 }
 0x709   : > { %v5385_v44 = vadd.f32 %v2357_v40, %v5289_v5  ;;  %v4047_v45 = vpop.f32.mrb[10].mxu1 }
 0x70a   : > { %v2404_v47 = vmul.f32 %v2391_v41, %v5382_v42  ;;  %v2372_v48 = vadd.f32 %v4047_v45, %v2276_v38  ;;  %v2366_v49 = vpop.f32.mrb[11].mxu1  ;;  %v2441_v45 = vld [vmem:[%s5795_s1 + $0x10] sm:$0xff] }
 0x70b   : > { %v2403_v50 = vmul.f32 %v2386_v29, %v5385_v44  ;;  %v2367_v51 = vadd.f32 %v2366_v49, %v2271_v28 }
 0x70c   : > { %v2432_v52 = vadd.f32 %v2419_v30, %v2404_v47  ;;  %v5390_v53 = vadd.f32 %v2372_v48, %v5294_v16 }
 0x70d   : > { %v2431_v54 = vadd.f32 %v2414_v32, %v2403_v50  ;;  %v5393_v3 = vadd.f32 %v2367_v51, %v5297_v27 }
 0x70e   : > { %v2436_v55 = vmax.f32 %v2432_v52, 0.0  ;;  %v2406_v5 = vmul.f32 %v2401_v43, %v5390_v53  ;;  %v2440_v43 = vld [vmem:[%s5795_s1 + $0x8] sm:$0xff] }
 0x70f   : > { %v2435_v57 = vmax.f32 %v2431_v54, 0.0  ;;  %v2405_v58 = vmul.f32 %v2396_v46, %v5393_v3  ;;  %v2442_v46 = vld [vmem:[%s5795_s1 + $0x18] sm:$0xff]  ;;  %s5803_s1 = sld [smem:[#allocation29_spill]] }
 0x710   : > { %v2434_v60 = vadd.f32 %v2429_v56, %v2406_v5 }
 0x711   : > { %v2433_v61 = vadd.f32 %v2424_v59, %v2405_v58  ;;  %v4655_v62 = vpack.i.bf16 %v2436_v55, %v2435_v57  ;;  %v4341_v16 = vpack.c.bf16 %v2436_v55, %v2435_v57 }
 0x712   : > { %v2438_v63 = vmax.f32 %v2434_v60, 0.0 }
 0x713   : > { %v2437_v0 = vmax.f32 %v2433_v61, 0.0  ;;  %4656 = vrot.lane.b32.xlu0 %v4655_v62, %s5707_s6 }
 0x715   : > { %v4660_v27 = vpack.i.bf16 %v2438_v63, %v2437_v0  ;;  %v4345_v1 = vpack.c.bf16 %v2438_v63, %v2437_v0 }
 0x717   : > { %4661 = vrot.lane.b32.xlu1 %v4660_v27, %s5707_s6  ;;  %4666 = vrot.lane.b32.xlu0 %v4655_v62, %s5705_s8  ;;  %s5802_s6 = sld [smem:[#allocation27_spill]] }
 0x71b   : > { %4671 = vrot.lane.b32.xlu1 %v4660_v27, %s5705_s8  ;;  %2479 = vperm.xlu0 %4573, %v2443_v2   ;;  %s5801_s8 = sld [smem:[#allocation28_spill]] }
 0x71d   : > { %v2655_v14 = vld [vmem:[%s5802_s6 + $0x8] sm:$0xff] }
 0x71f   : > { %2484 = vperm.xlu1 %4574, %v2444_v4   ;;  %2600 = vperm.xlu0 %4573, %v2594_v6  }
 0x723   : > { %2605 = vperm.xlu1 %4574, %v2595_v8   ;;  %2489 = vperm.xlu0 %4573, %v2445_v9  }
 0x727   : > { %2494 = vperm.xlu1 %4574, %v2446_v11   ;;  %2628 = vperm.xlu0 %4573, %v2622_v12  }
 0x72b   : > { %2633 = vperm.xlu1 %4574, %v2623_v13   ;;  %2610 = vperm.xlu0 %4573, %v2596_v15  }
 0x72f   : > { %2615 = vperm.xlu1 %4574, %v2597_v17   ;;  %2638 = vperm.xlu0 %4573, %v2624_v18  }
 0x733   : > { %2643 = vperm.xlu1 %4574, %v2625_v31  }
 0x785   : > { %v4657_v19 = vpop.permute.xlu0 %4656 }
 0x786   : > { %v4659_v20 = vunpack.i.h.bf16 %v4657_v19  ;;  %v4658_v21 = vunpack.i.l.bf16 %v4657_v19 }
 0x788   : > { %v4329_v22 = vpack.c.bf16 %v4659_v20, %v4658_v21  ;;  %v2658_v21 = vld [vmem:[%s5801_s8] sm:$0xff] }
 0x789   : > { %v4662_v23 = vpop.permute.xlu1 %4661  ;;  %v4667_v28 = vpop.permute.xlu0 %4666 }
 0x78a   : > { %v4664_v25 = vunpack.i.h.bf16 %v4662_v23  ;;  %v4663_v26 = vunpack.i.l.bf16 %v4662_v23  ;;  %4331 = vmatprep.subr.msk.bf16.mxu0 %vm5416_vm8, %v4329_v22  ;;  %v4669_v41 = vunpack.i.h.bf16 %v4667_v28  ;;  %v4668_v29 = vunpack.i.l.bf16 %v4667_v28  ;;  %v2660_v23 = vld [vmem:[%s5801_s8 + $0x10] sm:$0xff]  ;;  %v2808_v28 = vld [vmem:[%s5803_s1 + $0x8] sm:$0xff] }
 0x78b   : > { %4334 = vmatpush3.bf16.msk.msra.mxu0 %vm5416_vm8, %v4329_v22  ;;  %v2659_v22 = vld [vmem:[%s5801_s8 + $0x8] sm:$0xff] }
 0x78c   : > { %v4335_v38 = vpack.c.bf16 %v4664_v25, %v4663_v26  ;;  %v4349_v33 = vpack.c.bf16 %v4669_v41, %v4668_v29  ;;  %v2654_v25 = vld [vmem:[%s5802_s6] sm:$0xff]  ;;  %v2661_v26 = vld [vmem:[%s5801_s8 + $0x18] sm:$0xff]  ;;  %v2836_v29 = vld [vmem:[%s5806_s9 + $0x8] sm:$0xff]  ;;  %s5717_s8 = smov 124  }
 0x78d   : > { %v4672_v30 = vpop.permute.xlu1 %4671  ;;  %4102 = vmatprep.mubr.msk.f32.mxu1 %vm1646_vm2, %v2654_v25  ;;  %v2835_v41 = vld [vmem:[%s5806_s9] sm:$0xff] }
 0x78e   : > { %4337 = vmatprep.subr.msk.bf16.mxu0 %vm5416_vm8, %v4335_v38  ;;  %v4674_v24 = vunpack.i.h.bf16 %v4672_v30  ;;  %v4673_v39 = vunpack.i.l.bf16 %v4672_v30  ;;  %v2809_v30 = vld [vmem:[%s5803_s1 + $0x10] sm:$0xff] }
 0x78f   : > { %4340 = vmatpush3.bf16.msk.msra.mxu0 %vm5416_vm8, %v4335_v38  ;;  %v2807_v38 = vld [vmem:[%s5803_s1] sm:$0xff] }
 0x790   : > { %4342 = vmatprep.subr.bf16.mxu0 %v4341_v16  ;;  %v4355_v40 = vpack.c.bf16 %v4674_v24, %v4673_v39  ;;  %v2837_v24 = vld [vmem:[%s5806_s9 + $0x10] sm:$0xff]  ;;  %v2838_v39 = vld [vmem:[%s5806_s9 + $0x18] sm:$0xff]  ;;  %s5810_s9 = sld [smem:[#allocation34_spill]] }
 0x793   : > { %4344 = vmatpush3.bf16.msra.mxu0 %v4341_v16 }
 0x794   : > { %4346 = vmatprep.subr.bf16.mxu0 %v4345_v1 }
 0x797   : > { %4348 = vmatpush3.bf16.msra.mxu0 %v4345_v1 }
 0x798   : > { %4351 = vmatprep.subr.msk.bf16.mxu0 %vm5429_vm10, %v4349_v33 }
 0x79a   : > { %v2480_v48 = vpop.permute.xlu0 %2479 }
 0x79b   : > { %4354 = vmatpush3.bf16.msk.msra.mxu0 %vm5429_vm10, %v4349_v33  ;;  %v2810_v33 = vld [vmem:[%s5803_s1 + $0x18] sm:$0xff]  ;;  %s5809_s1 = sld [smem:[#allocation31_spill]] }
 0x79c   : > { %4357 = vmatprep.subr.msk.bf16.mxu0 %vm5429_vm10, %v4355_v40 }
 0x79e   : > { %v2485_v47 = vpop.permute.xlu1 %2484  ;;  %v2601_v50 = vpop.permute.xlu0 %2600 }
 0x79f   : > { %4360 = vmatpush3.bf16.msk.msra.mxu0 %vm5429_vm10, %v4355_v40 }
 0x7a1   : > { %v2868_v10 = vld [vmem:[%s5809_s1 + $0x8] sm:$0xff] }
 0x7a2   : > { %4073 = vmatmul.mubr.msk.f32.vlgmr.msra.gmra.mrb[12].mxu0 %vm1646_vm2, %v2440_v43  ;;  %v2606_v49 = vpop.permute.xlu1 %2605  ;;  %v2490_v52 = vpop.permute.xlu0 %2489 }
 0x7a3   : > { %4075 = vmatprep.mubr.msk.f32.mxu0 %vm1646_vm2, %v2441_v45 }
 0x7a6   : > { %4076 = vmatmul.mubr.msk.f32.gmra.mrb[14].mxu0 %vm1646_vm2, %v2442_v46  ;;  %v2495_v51 = vpop.permute.xlu1 %2494  ;;  %v2629_v55 = vpop.permute.xlu0 %2628 }
 0x7aa   : > { %v2634_v54 = vpop.permute.xlu1 %2633  ;;  %v2611_v60 = vpop.permute.xlu0 %2610 }
 0x7ae   : > { %v2616_v58 = vpop.permute.xlu1 %2615  ;;  %v2639_v11 = vpop.permute.xlu0 %2638 }
 0x7b2   : > { %v2644_v7 = vpop.permute.xlu1 %2643 }
 0x875   : > { %v4074_v5 = vpop.f32.mrb[12].mxu0 }
 0x876   : > { %v2581_v56 = vadd.f32 %v4074_v5, %v2485_v47  ;;  %v2575_v57 = vpop.f32.mrb[13].mxu0 }
 0x877   : > { %v2576_v59 = vadd.f32 %v2575_v57, %v2480_v48 }
 0x878   : > { %v2619_v61 = vmul.f32 %v2606_v49, %v2581_v56 }
 0x879   : > { %v2618_v62 = vmul.f32 %v2601_v50, %v2576_v59  ;;  %v4077_v16 = vpop.f32.mrb[14].mxu0  ;;  %v2656_v59 = vld [vmem:[%s5802_s6 + $0x10] sm:$0xff] }
 0x87a   : > { %v2647_v63 = vadd.f32 %v2634_v54, %v2619_v61  ;;  %v2591_v0 = vadd.f32 %v4077_v16, %v2495_v51  ;;  %v2585_v27 = vpop.f32.mrb[15].mxu0 }
 0x87b   : > { %v2646_v1 = vadd.f32 %v2629_v55, %v2618_v62  ;;  %v2586_v2 = vadd.f32 %v2585_v27, %v2490_v52 }
 0x87c   : > { %v2651_v4 = vmax.f32 %v2647_v63, 0.0  ;;  %v2621_v6 = vmul.f32 %v2616_v58, %v2591_v0 }
 0x87d   : > { %v2650_v8 = vmax.f32 %v2646_v1, 0.0  ;;  %v2620_v9 = vmul.f32 %v2611_v60, %v2586_v2  ;;  %v2657_v60 = vld [vmem:[%s5802_s6 + $0x18] sm:$0xff]  ;;  %s5719_s6 = smov 4  }
 0x87e   : > { %v2649_v12 = vadd.f32 %v2644_v7, %v2621_v6 }
 0x87f   : > { %v2648_v13 = vadd.f32 %v2639_v11, %v2620_v9  ;;  %v4675_v15 = vpack.i.bf16 %v2651_v4, %v2650_v8  ;;  %v4373_v17 = vpack.c.bf16 %v2651_v4, %v2650_v8 }
 0x880   : > { %v2653_v18 = vmax.f32 %v2649_v12, 0.0 }
 0x881   : > { %v2652_v31 = vmax.f32 %v2648_v13, 0.0  ;;  %4676 = vrot.lane.b32.xlu0 %v4675_v15, %s5804_s3 }
 0x883   : > { %v4680_v19 = vpack.i.bf16 %v2653_v18, %v2652_v31  ;;  %v4377_v20 = vpack.c.bf16 %v2653_v18, %v2652_v31 }
 0x885   : > { %4681 = vrot.lane.b32.xlu1 %v4680_v19, %s5804_s3  ;;  %4686 = vrot.lane.b32.xlu0 %v4675_v15, %s5805_s5  ;;  %s5808_s3 = sld [smem:[#allocation33_spill]] }
 0x889   : > { %4691 = vrot.lane.b32.xlu1 %v4680_v19, %s5805_s5  ;;  %2688 = vperm.xlu0 %4573, %v2658_v21   ;;  %s5807_s5 = sld [smem:[#allocation32_spill]] }
 0x88d   : > { %2693 = vperm.xlu1 %4574, %v2659_v22   ;;  %2698 = vperm.xlu0 %4573, %v2660_v23  }
 0x891   : > { %2703 = vperm.xlu1 %4574, %v2661_v26   ;;  %2813 = vperm.xlu0 %4573, %v2807_v38  }
 0x895   : > { %2818 = vperm.xlu1 %4574, %v2808_v28   ;;  %2841 = vperm.xlu0 %4573, %v2835_v41  }
 0x899   : > { %2846 = vperm.xlu1 %4574, %v2836_v29   ;;  %2823 = vperm.xlu0 %4573, %v2809_v30  }
 0x89d   : > { %2828 = vperm.xlu1 %4574, %v2810_v33   ;;  %2851 = vperm.xlu0 %4573, %v2837_v24  }
 0x8a1   : > { %2856 = vperm.xlu1 %4574, %v2838_v39  }
 0x8f3   : > { %v4677_v40 = vpop.permute.xlu0 %4676 }
 0x8f4   : > { %v4679_v43 = vunpack.i.h.bf16 %v4677_v40  ;;  %v4678_v45 = vunpack.i.l.bf16 %v4677_v40  ;;  %v2871_v40 = vld [vmem:[%s5807_s5] sm:$0xff] }
 0x8f6   : > { %v4361_v46 = vpack.c.bf16 %v4679_v43, %v4678_v45  ;;  %v2872_v43 = vld [vmem:[%s5807_s5 + $0x8] sm:$0xff]  ;;  %v3022_v45 = vld [vmem:[%s5808_s3] sm:$0xff] }
 0x8f7   : > { %v4682_v47 = vpop.permute.xlu1 %4681  ;;  %v4687_v51 = vpop.permute.xlu0 %4686 }
 0x8f8   : > { %v4684_v48 = vunpack.i.h.bf16 %v4682_v47  ;;  %v4683_v49 = vunpack.i.l.bf16 %v4682_v47  ;;  %4363 = vmatprep.subr.msk.bf16.mxu1 %vm5416_vm8, %v4361_v46  ;;  %v4689_v52 = vunpack.i.h.bf16 %v4687_v51  ;;  %v4688_v54 = vunpack.i.l.bf16 %v4687_v51  ;;  %v3023_v47 = vld [vmem:[%s5808_s3 + $0x8] sm:$0xff] }
 0x8f9   : > { %4366 = vmatpush3.bf16.msk.msra.mxu1 %vm5416_vm8, %v4361_v46  ;;  %v2867_v46 = vld [vmem:[%s5809_s1] sm:$0xff]  ;;  %v3051_v51 = vld [vmem:[%s5810_s9 + $0x8] sm:$0xff] }
 0x8fa   : > { %v4367_v50 = vpack.c.bf16 %v4684_v48, %v4683_v49  ;;  %v4381_v5 = vpack.c.bf16 %v4689_v52, %v4688_v54  ;;  %v2873_v48 = vld [vmem:[%s5807_s5 + $0x10] sm:$0xff]  ;;  %4132 = vmatprep.mubr.msk.f32.mxu0 %vm1646_vm2, %v2867_v46  ;;  %v2874_v49 = vld [vmem:[%s5807_s5 + $0x18] sm:$0xff]  ;;  %s5819_s5 = smov 124  }
 0x8fb   : > { %v4692_v55 = vpop.permute.xlu1 %4691  ;;  %v3024_v52 = vld [vmem:[%s5808_s3 + $0x10] sm:$0xff]  ;;  %v3025_v54 = vld [vmem:[%s5808_s3 + $0x18] sm:$0xff]  ;;  %s5818_s3 = smov 4  }
 0x8fc   : > { %4369 = vmatprep.subr.msk.bf16.mxu1 %vm5416_vm8, %v4367_v50  ;;  %v4694_v56 = vunpack.i.h.bf16 %v4692_v55  ;;  %v4693_v57 = vunpack.i.l.bf16 %v4692_v55  ;;  %v3052_v55 = vld [vmem:[%s5810_s9 + $0x10] sm:$0xff] }
 0x8fd   : > { %4372 = vmatpush3.bf16.msk.msra.mxu1 %vm5416_vm8, %v4367_v50  ;;  %v3050_v50 = vld [vmem:[%s5810_s9] sm:$0xff] }
 0x8fe   : > { %4374 = vmatprep.subr.bf16.mxu1 %v4373_v17  ;;  %v4387_v58 = vpack.c.bf16 %v4694_v56, %v4693_v57 }
 0x901   : > { %4376 = vmatpush3.bf16.msra.mxu1 %v4373_v17 }
 0x902   : > { %4378 = vmatprep.subr.bf16.mxu1 %v4377_v20 }
 0x905   : > { %4380 = vmatpush3.bf16.msra.mxu1 %v4377_v20 }
 0x906   : > { %4383 = vmatprep.subr.msk.bf16.mxu1 %vm5429_vm10, %v4381_v5 }
 0x908   : > { %v2689_v62 = vpop.permute.xlu0 %2688 }
 0x909   : > { %4386 = vmatpush3.bf16.msk.msra.mxu1 %vm5429_vm10, %v4381_v5  ;;  %v3053_v5 = vld [vmem:[%s5810_s9 + $0x18] sm:$0xff]  ;;  %s5820_s9 = sld [smem:[#allocation38_spill]] }
 0x90a   : > { %4389 = vmatprep.subr.msk.bf16.mxu1 %vm5429_vm10, %v4387_v58 }
 0x90c   : > { %v2694_v61 = vpop.permute.xlu1 %2693  ;;  %v2699_v63 = vpop.permute.xlu0 %2698 }
 0x90d   : > { %4392 = vmatpush3.bf16.msk.msra.mxu1 %vm5429_vm10, %v4387_v58 }
 0x910   : > { %4103 = vmatmul.mubr.msk.f32.vlgmr.msra.gmra.mrb[12].mxu1 %vm1646_vm2, %v2655_v14  ;;  %v2704_v16 = vpop.permute.xlu1 %2703  ;;  %v2814_v27 = vpop.permute.xlu0 %2813 }
 0x911   : > { %4105 = vmatprep.mubr.msk.f32.mxu1 %vm1646_vm2, %v2656_v59 }
 0x914   : > { %4106 = vmatmul.mubr.msk.f32.gmra.mrb[14].mxu1 %vm1646_vm2, %v2657_v60  ;;  %v2819_v0 = vpop.permute.xlu1 %2818  ;;  %v2842_v2 = vpop.permute.xlu0 %2841 }
 0x918   : > { %v2847_v1 = vpop.permute.xlu1 %2846  ;;  %v2824_v13 = vpop.permute.xlu0 %2823 }
 0x91c   : > { %v2829_v9 = vpop.permute.xlu1 %2828  ;;  %v2852_v28 = vpop.permute.xlu0 %2851 }
 0x920   : > { %v2857_v25 = vpop.permute.xlu1 %2856 }
 0x9e3   : > { %v4104_v4 = vpop.f32.mrb[12].mxu1 }
 0x9e4   : > { %v2790_v32 = vadd.f32 %v4104_v4, %v2694_v61  ;;  %v2784_v6 = vpop.f32.mrb[13].mxu1 }
 0x9e5   : > { %v2785_v7 = vadd.f32 %v2784_v6, %v2689_v62 }
 0x9e6   : > { %v5488_v8 = vadd.f32 %v2790_v32, %v5382_v42 }
 0x9e7   : > { %v5491_v11 = vadd.f32 %v2785_v7, %v5385_v44  ;;  %v4107_v12 = vpop.f32.mrb[14].mxu1 }
 0x9e8   : > { %v2832_v15 = vmul.f32 %v2819_v0, %v5488_v8  ;;  %v2800_v17 = vadd.f32 %v4107_v12, %v2704_v16  ;;  %v2794_v18 = vpop.f32.mrb[15].mxu1  ;;  %v2870_v12 = vld [vmem:[%s5809_s1 + $0x18] sm:$0xff] }
 0x9e9   : > { %v2831_v31 = vmul.f32 %v2814_v27, %v5491_v11  ;;  %v2795_v19 = vadd.f32 %v2794_v18, %v2699_v63 }
 0x9ea   : > { %v2860_v20 = vadd.f32 %v2847_v1, %v2832_v15  ;;  %v5496_v21 = vadd.f32 %v2800_v17, %v5390_v53 }
 0x9eb   : > { %v2859_v22 = vadd.f32 %v2842_v2, %v2831_v31  ;;  %v5499_v42 = vadd.f32 %v2795_v19, %v5393_v3 }
 0x9ec   : > { %v2864_v23 = vmax.f32 %v2860_v20, 0.0  ;;  %v2834_v44 = vmul.f32 %v2829_v9, %v5496_v21  ;;  %v2869_v9 = vld [vmem:[%s5809_s1 + $0x10] sm:$0xff]  ;;  %s5817_s1 = sld [smem:[#allocation9_spill]] }
 0x9ed   : > { %v2863_v26 = vmax.f32 %v2859_v22, 0.0  ;;  %v2833_v38 = vmul.f32 %v2824_v13, %v5499_v42 }
 0x9ee   : > { %v2862_v41 = vadd.f32 %v2857_v25, %v2834_v44 }
 0x9ef   : > { %v2861_v29 = vadd.f32 %v2852_v28, %v2833_v38  ;;  %v4695_v30 = vpack.i.bf16 %v2864_v23, %v2863_v26  ;;  %v4405_v53 = vpack.c.bf16 %v2864_v23, %v2863_v26 }
 0x9f0   : > { %v2866_v33 = vmax.f32 %v2862_v41, 0.0 }
 0x9f1   : > { %v2865_v24 = vmax.f32 %v2861_v29, 0.0  ;;  %4696 = vrot.lane.b32.xlu0 %v4695_v30, %s5719_s6 }
 0x9f3   : > { %v4700_v3 = vpack.i.bf16 %v2866_v33, %v2865_v24  ;;  %v4409_v39 = vpack.c.bf16 %v2866_v33, %v2865_v24 }
 0x9f5   : > { %4701 = vrot.lane.b32.xlu1 %v4700_v3, %s5719_s6  ;;  %4706 = vrot.lane.b32.xlu0 %v4695_v30, %s5717_s8  ;;  %s5816_s6 = sld [smem:[#allocation35_spill]] }
 0x9f9   : > { %4711 = vrot.lane.b32.xlu1 %v4700_v3, %s5717_s8  ;;  %2907 = vperm.xlu0 %4573, %v2871_v40   ;;  %s5815_s8 = sld [smem:[#allocation36_spill]] }
 0x9fb   : > { %v3083_v14 = vld [vmem:[%s5816_s6 + $0x8] sm:$0xff] }
 0x9fd   : > { %2912 = vperm.xlu1 %4574, %v2872_v43   ;;  %3028 = vperm.xlu0 %4573, %v3022_v45  }
 0xa01   : > { %3033 = vperm.xlu1 %4574, %v3023_v47   ;;  %2917 = vperm.xlu0 %4573, %v2873_v48  }
 0xa05   : > { %2922 = vperm.xlu1 %4574, %v2874_v49   ;;  %3056 = vperm.xlu0 %4573, %v3050_v50  }
 0xa09   : > { %3061 = vperm.xlu1 %4574, %v3051_v51   ;;  %3038 = vperm.xlu0 %4573, %v3024_v52  }
 0xa0d   : > { %3043 = vperm.xlu1 %4574, %v3025_v54   ;;  %3066 = vperm.xlu0 %4573, %v3052_v55  }
 0xa11   : > { %3071 = vperm.xlu1 %4574, %v3053_v5  }
 0xa63   : > { %v4697_v56 = vpop.permute.xlu0 %4696 }
 0xa64   : > { %v4699_v57 = vunpack.i.h.bf16 %v4697_v56  ;;  %v4698_v58 = vunpack.i.l.bf16 %v4697_v56 }
 0xa66   : > { %v4393_v59 = vpack.c.bf16 %v4699_v57, %v4698_v58  ;;  %v3086_v57 = vld [vmem:[%s5815_s8] sm:$0xff]  ;;  %v3087_v58 = vld [vmem:[%s5815_s8 + $0x8] sm:$0xff] }
 0xa67   : > { %v4702_v60 = vpop.permute.xlu1 %4701  ;;  %v4707_v63 = vpop.permute.xlu0 %4706 }
 0xa68   : > { %v4704_v61 = vunpack.i.h.bf16 %v4702_v60  ;;  %v4703_v62 = vunpack.i.l.bf16 %v4702_v60  ;;  %4395 = vmatprep.subr.msk.bf16.mxu0 %vm5522_vm12, %v4393_v59  ;;  %v4709_v0 = vunpack.i.h.bf16 %v4707_v63  ;;  %v4708_v27 = vunpack.i.l.bf16 %v4707_v63  ;;  %v3082_v60 = vld [vmem:[%s5816_s6] sm:$0xff]  ;;  %v1408_v63 = vld [vmem:[%s5817_s1 + $0x10] sm:$0xff] }
 0xa69   : > { %4398 = vmatpush3.bf16.msk.msra.mxu0 %vm5522_vm12, %v4393_v59  ;;  %v3088_v59 = vld [vmem:[%s5815_s8 + $0x10] sm:$0xff]  ;;  %4162 = vmatprep.mubr.msk.f32.mxu1 %vm1646_vm2, %v3082_v60  ;;  %v4854_v60 = vmov 0.0  }
 0xa6a   : > { %v4399_v16 = vpack.c.bf16 %v4704_v61, %v4703_v62  ;;  %v4413_v4 = vpack.c.bf16 %v4709_v0, %v4708_v27  ;;  %v3089_v61 = vld [vmem:[%s5815_s8 + $0x18] sm:$0xff]  ;;  %v1406_v62 = vld [vmem:[%s5817_s1] sm:$0xff] }
 0xa6b   : > { %v4712_v1 = vpop.permute.xlu1 %4711  ;;  %v1409_v0 = vld [vmem:[%s5817_s1 + $0x18] sm:$0xff]  ;;  %v3340_v27 = vld [vmem:[%s5820_s9] sm:$0xff] }
 0xa6c   : > { %4401 = vmatprep.subr.msk.bf16.mxu0 %vm5522_vm12, %v4399_v16  ;;  %v4714_v32 = vunpack.i.h.bf16 %v4712_v1  ;;  %v4713_v6 = vunpack.i.l.bf16 %v4712_v1  ;;  %v3341_v1 = vld [vmem:[%s5820_s9 + $0x8] sm:$0xff] }
 0xa6d   : > { %4404 = vmatpush3.bf16.msk.msra.mxu0 %vm5522_vm12, %v4399_v16  ;;  %v1407_v16 = vld [vmem:[%s5817_s1 + $0x8] sm:$0xff]  ;;  %s1262_s1 = sand.u32 1, %s4793_s16  }
 0xa6e   : > { %4406 = vmatprep.subr.bf16.mxu0 %v4405_v53  ;;  %v4419_v7 = vpack.c.bf16 %v4714_v32, %v4713_v6  ;;  %v3343_v32 = vld [vmem:[%s5820_s9 + $0x18] sm:$0xff] }
 0xa71   : > { %4408 = vmatpush3.bf16.msra.mxu0 %v4405_v53 }
 0xa72   : > { %4410 = vmatprep.subr.bf16.mxu0 %v4409_v39 }
 0xa75   : > { %4412 = vmatpush3.bf16.msra.mxu0 %v4409_v39 }
 0xa76   : > { %4415 = vmatprep.subr.msk.bf16.mxu0 %vm5535_vm14, %v4413_v4 }
 0xa78   : > { %v2908_v15 = vpop.permute.xlu0 %2907 }
 0xa79   : > { %4418 = vmatpush3.bf16.msk.msra.mxu0 %vm5535_vm14, %v4413_v4  ;;  %v3342_v4 = vld [vmem:[%s5820_s9 + $0x10] sm:$0xff]  ;;  %s5623_s9 = scalar_lea.sflag [#allocation3], %s1262_s1 }
 0xa7a   : > { %4421 = vmatprep.subr.msk.bf16.mxu0 %vm5535_vm14, %v4419_v7 }
 0xa7c   : > { %v2913_v13 = vpop.permute.xlu1 %2912  ;;  %v3029_v18 = vpop.permute.xlu0 %3028 }
 0xa7d   : > { %4424 = vmatpush3.bf16.msk.msra.mxu0 %vm5535_vm14, %v4419_v7 }
 0xa80   : > { %4133 = vmatmul.mubr.msk.f32.vlgmr.msra.gmra.mrb[16].mxu0 %vm1646_vm2, %v2868_v10  ;;  %v3034_v17 = vpop.permute.xlu1 %3033  ;;  %v2918_v19 = vpop.permute.xlu0 %2917 }
 0xa81   : > { %4135 = vmatprep.mubr.msk.f32.mxu0 %vm1646_vm2, %v2869_v9 }
 0xa84   : > { %4136 = vmatmul.mubr.msk.f32.gmra.mrb[18].mxu0 %vm1646_vm2, %v2870_v12  ;;  %v2923_v31 = vpop.permute.xlu1 %2922  ;;  %v3057_v22 = vpop.permute.xlu0 %3056 }
 0xa85   : > { %4190 = vmatprep.mubr.msk.f32.mxu0 %vm4853_vm15, %v4854_v60 }
 0xa88   : > { %v3062_v20 = vpop.permute.xlu1 %3061  ;;  %v3039_v28 = vpop.permute.xlu0 %3038 }
 0xa8c   : > { %v3044_v26 = vpop.permute.xlu1 %3043  ;;  %v3067_v48 = vpop.permute.xlu0 %3066 }
 0xa90   : > { %v3072_v45 = vpop.permute.xlu1 %3071 }
 0xb53   : > { %v4134_v23 = vpop.f32.mrb[16].mxu0 }
 0xb54   : > { %v3009_v44 = vadd.f32 %v4134_v23, %v2913_v13  ;;  %v3003_v25 = vpop.f32.mrb[17].mxu0 }
 0xb55   : > { %v3004_v38 = vadd.f32 %v3003_v25, %v2908_v15 }
 0xb56   : > { %v3047_v41 = vmul.f32 %v3034_v17, %v3009_v44 }
 0xb57   : > { %v3046_v29 = vmul.f32 %v3029_v18, %v3004_v38  ;;  %v4137_v30 = vpop.f32.mrb[18].mxu0  ;;  %v3085_v38 = vld [vmem:[%s5816_s6 + $0x18] sm:$0xff] }
 0xb58   : > { %v3075_v53 = vadd.f32 %v3062_v20, %v3047_v41  ;;  %v3019_v33 = vadd.f32 %v4137_v30, %v2923_v31  ;;  %v3013_v24 = vpop.f32.mrb[19].mxu0 }
 0xb59   : > { %v3074_v3 = vadd.f32 %v3057_v22, %v3046_v29  ;;  %v3014_v39 = vadd.f32 %v3013_v24, %v2918_v19 }
 0xb5a   : > { %v3079_v40 = vmax.f32 %v3075_v53, 0.0  ;;  %v3049_v43 = vmul.f32 %v3044_v26, %v3019_v33  ;;  %v3084_v26 = vld [vmem:[%s5816_s6 + $0x10] sm:$0xff] }
 0xb5b   : > { %v3078_v46 = vmax.f32 %v3074_v3, 0.0  ;;  %v3048_v47 = vmul.f32 %v3039_v28, %v3014_v39 }
 0xb5c   : > { %v3077_v49 = vadd.f32 %v3072_v45, %v3049_v43 }
 0xb5d   : > { %v3076_v50 = vadd.f32 %v3067_v48, %v3048_v47  ;;  %v4715_v51 = vpack.i.bf16 %v3079_v40, %v3078_v46  ;;  %v4437_v52 = vpack.c.bf16 %v3079_v40, %v3078_v46 }
 0xb5e   : > { %v3081_v54 = vmax.f32 %v3077_v49, 0.0 }
 0xb5f   : > { %v3080_v55 = vmax.f32 %v3076_v50, 0.0  ;;  %4716 = vrot.lane.b32.xlu0 %v4715_v51, %s5818_s3 }
 0xb61   : > { %v4720_v5 = vpack.i.bf16 %v3081_v54, %v3080_v55  ;;  %v4441_v56 = vpack.c.bf16 %v3081_v54, %v3080_v55 }
 0xb63   : > { %4721 = vrot.lane.b32.xlu1 %v4720_v5, %s5818_s3  ;;  %4726 = vrot.lane.b32.xlu0 %v4715_v51, %s5819_s5  ;;  %s4855_s3 = smov 112  }
 0xb67   : > { %4731 = vrot.lane.b32.xlu1 %v4720_v5, %s5819_s5  ;;  %3116 = vperm.xlu0 %4573, %v3086_v57   ;;  %s5821_s5 = sld [smem:[#allocation37_spill]] }
 0xb6b   : > { %3121 = vperm.xlu1 %4574, %v3087_v58   ;;  %3126 = vperm.xlu0 %4573, %v3088_v59  }
 0xb6d   : > { %v3235_v28 = vld [vmem:[%s5821_s5] sm:$0xff] }
 0xb6f   : > { %3131 = vperm.xlu1 %4574, %v3089_v61   ;;  %1412 = vperm.xlu0 %4573, %v1406_v62  }
 0xb73   : > { %1417 = vperm.xlu1 %4574, %v1407_v16   ;;  %1422 = vperm.xlu0 %4573, %v1408_v63  }
 0xb77   : > { %1427 = vperm.xlu1 %4574, %v1409_v0   ;;  %3346 = vperm.xlu0 %4573, %v3340_v27  }
 0xb7b   : > { %3351 = vperm.xlu1 %4574, %v3341_v1   ;;  %3356 = vperm.xlu0 %4573, %v3342_v4  }
 0xb7f   : > { %3361 = vperm.xlu1 %4574, %v3343_v32  }
 0xbd1   : > { %v4717_v6 = vpop.permute.xlu0 %4716 }
 0xbd2   : > { %v4719_v7 = vunpack.i.h.bf16 %v4717_v6  ;;  %v4718_v10 = vunpack.i.l.bf16 %v4717_v6 }
 0xbd4   : > { %v4425_v9 = vpack.c.bf16 %v4719_v7, %v4718_v10 }
 0xbd5   : > { %v4722_v12 = vpop.permute.xlu1 %4721  ;;  %v4727_v18 = vpop.permute.xlu0 %4726 }
 0xbd6   : > { %v4724_v13 = vunpack.i.h.bf16 %v4722_v12  ;;  %v4723_v15 = vunpack.i.l.bf16 %v4722_v12  ;;  %4427 = vmatprep.subr.msk.bf16.mxu1 %vm5522_vm12, %v4425_v9  ;;  %v4729_v31 = vunpack.i.h.bf16 %v4727_v18  ;;  %v4728_v19 = vunpack.i.l.bf16 %v4727_v18 }
 0xbd7   : > { %4430 = vmatpush3.bf16.msk.msra.mxu1 %vm5522_vm12, %v4425_v9 }
 0xbd8   : > { %v4431_v17 = vpack.c.bf16 %v4724_v13, %v4723_v15  ;;  %v4445_v22 = vpack.c.bf16 %v4729_v31, %v4728_v19  ;;  %v3380_v19 = vld [vmem:[%s5062_s20] sm:$0x7] }
 0xbd9   : > { %v4732_v20 = vpop.permute.xlu1 %4731 }
 0xbda   : > { %4433 = vmatprep.subr.msk.bf16.mxu1 %vm5522_vm12, %v4431_v17  ;;  %v4734_v23 = vunpack.i.h.bf16 %v4732_v20  ;;  %v4733_v44 = vunpack.i.l.bf16 %v4732_v20 }
 0xbdb   : > { %4436 = vmatpush3.bf16.msk.msra.mxu1 %vm5522_vm12, %v4431_v17 }
 0xbdc   : > { %4438 = vmatprep.subr.bf16.mxu1 %v4437_v52  ;;  %v4451_v25 = vpack.c.bf16 %v4734_v23, %v4733_v44 }
 0xbdf   : > { %4440 = vmatpush3.bf16.msra.mxu1 %v4437_v52  ;;  %v3237_v52 = vld [vmem:[%s5821_s5 + $0x10] sm:$0xff] }
 0xbe0   : > { %4442 = vmatprep.subr.bf16.mxu1 %v4441_v56 }
 0xbe3   : > { %4444 = vmatpush3.bf16.msra.mxu1 %v4441_v56 }
 0xbe4   : > { %4447 = vmatprep.subr.msk.bf16.mxu1 %vm5535_vm14, %v4445_v22 }
 0xbe6   : > { %v3117_v29 = vpop.permute.xlu0 %3116 }
 0xbe7   : > { %4450 = vmatpush3.bf16.msk.msra.mxu1 %vm5535_vm14, %v4445_v22 }
 0xbe8   : > { %4453 = vmatprep.subr.msk.bf16.mxu1 %vm5535_vm14, %v4451_v25 }
 0xbea   : > { %v3122_v41 = vpop.permute.xlu1 %3121  ;;  %v3127_v43 = vpop.permute.xlu0 %3126 }
 0xbeb   : > { %4456 = vmatpush3.bf16.msk.msra.mxu1 %vm5535_vm14, %v4451_v25 }
 0xbee   : > { %4163 = vmatmul.mubr.msk.f32.vlgmr.msra.gmra.mrb[16].mxu1 %vm1646_vm2, %v3083_v14  ;;  %v3132_v3 = vpop.permute.xlu1 %3131  ;;  %v1413_v55 = vpop.permute.xlu0 %1412 }
 0xbef   : > { %4165 = vmatprep.mubr.msk.f32.mxu1 %vm1646_vm2, %v3084_v26  ;;  %v1510_v57 = vadd.f32 %v5239_v35, %v1413_v55 }
 0xbf2   : > { %4166 = vmatmul.mubr.msk.f32.gmra.mrb[18].mxu1 %vm1646_vm2, %v3085_v38  ;;  %v1418_v54 = vpop.permute.xlu1 %1417 }
 0xbf3   : > { %4176 = vmatprep.mubr.msk.f32.mxu1 %vm1430_vm1, %v3235_v28  ;;  %v1515_v56 = vadd.f32 %v5237_v34, %v1418_v54 }
 0xbf6   : > { %v1428_v5 = vpop.permute.xlu1 %1427 }
 0xbf7   : > { %v1525_v0 = vadd.f32 %v5241_v36, %v1428_v5  ;;  %v3381_v36 = vld [vmem:[%s5067_s27] sm:$0x7] }
 0xbfa   : > { %v3352_v58 = vpop.permute.xlu1 %3351 }
 0xbfe   : > { %v3362_v6 = vpop.permute.xlu1 %3361 }
 0xcc1   : > { %v4164_v30 = vpop.f32.mrb[16].mxu1 }
 0xcc2   : > { %v3218_v53 = vadd.f32 %v4164_v30, %v3122_v41  ;;  %v3212_v33 = vpop.f32.mrb[17].mxu1 }
 0xcc3   : > { %v3213_v24 = vadd.f32 %v3212_v33, %v3117_v29 }
 0xcc4   : > { %v3232_v2 = vadd.f32 %v3218_v53, %v5488_v8  ;;  %v3236_v8 = vld [vmem:[%s5821_s5 + $0x8] sm:$0xff] }
 0xcc5   : > { %v3231_v39 = vadd.f32 %v3213_v24, %v5491_v11  ;;  %v4167_v40 = vpop.f32.mrb[18].mxu1  ;;  %v3238_v11 = vld [vmem:[%s5821_s5 + $0x18] sm:$0xff]  ;;  %s3634_s5 = sshll.u32 %s1262_s1, 5 }
 0xcc6   : > { %v3228_v45 = vadd.f32 %v4167_v40, %v3132_v3  ;;  %v3222_v46 = vpop.f32.mrb[19].mxu1  ;;  %s1264_s6 = scalar_lea.vmem [#allocation2], %s3634_s5 }
 0xcc7   : > { %v3223_v47 = vadd.f32 %v3222_v46, %v3127_v43  ;;  %v4457_v48 = vpack.c.bf16 %v3232_v2, %v3231_v39  ;;  %s3502_s5 = sshll.u32 %s1264_s6, 4  ;;  %s5617_s5 = int_to_ptr.vmem [resolvable:$true] %s3502_s5 }
 0xcc8   : > { %v3234_v49 = vadd.f32 %v3228_v45, %v5496_v21  ;;  %v4852_v21 = vmov 0.0|0.0   ;;  %s4739_s12 = scalar_lea.vmem %s5617_s5, 512  ;;  %p4746_p0 = scmp.lt.s32.totalorder %s5617_s5, %s4744_s14 }
 0xcc9   : > { %v3233_v50 = vadd.f32 %v3223_v47, %v5499_v42  ;;  %4458 = vmatprep.subr.bf16.mxu1 %v4457_v48  ;;  %4465 = vmatprep.subr.bf16.mxu0 %v4852_v21  ;;  %v1423_v42 = vpop.permute.xlu0 %1422  ;;  %p4740_p11 = scmp.ne.s32.totalorder %s5617_s5, %s4739_s12  ;;  %p4747_p1 = scmp.lt.s32.totalorder %s4745_s17, %s4739_s12 }
 0xcca   : > { %4460 = vmatpush3.bf16.msra.mxu1 %v4457_v48  ;;  %v1520_v1 = vadd.f32 %v5243_v37, %v1423_v42 }
 0xccb   : > { %v4461_v51 = vpack.c.bf16 %v3234_v49, %v3233_v50  ;;  %p4741_p12 = pnand %p4740_p11, %p5117_p5  ;;  %p4748_p2 = por %p4747_p1, %p4746_p0 }
 0xccd   : > { %4462 = vmatprep.subr.bf16.mxu1 %v4461_v51  ;;  %v3347_v61 = vpop.permute.xlu0 %3346  ;;  %p4742_p13 = pneg %p4741_p12 }
 0xcce   : > { %4464 = vmatpush3.bf16.msra.mxu1 %v4461_v51 }
 0xccf   : > { %p4749_p3 = pnand %p4748_p2, %p4742_p13 }
 0xcd1   : > { %4177 = vmatmul.mubr.msk.f32.vlgmr.msra.gmra.mrb[20].mxu1 %vm1430_vm1, %v3236_v8  ;;  %v3357_v10 = vpop.permute.xlu0 %3356 }
 0xcd2   : > { %4179 = vmatprep.mubr.msk.f32.mxu1 %vm1430_vm1, %v3237_v52 }
 0xcd5   : > { %4180 = vmatmul.mubr.msk.f32.gmra.mrb[22].mxu1 %vm1430_vm1, %v3238_v11 }
 0xda4   : > { %v4178_v59 = vpop.f32.mrb[20].mxu1 }
 0xda5   : > { %v3337_v62 = vadd.f32 %v4178_v59, %v1515_v56  ;;  %v3317_v16 = vpop.f32.mrb[21].mxu1 }
 0xda6   : > { %v3336_v63 = vadd.f32 %v3317_v16, %v1510_v57 }
 0xda7   : > { %v3365_v27 = vadd.f32 %v3352_v58, %v3337_v62 }
 0xda8   : > { %v3364_v4 = vadd.f32 %v3347_v61, %v3336_v63  ;;  %v4181_v34 = vpop.f32.mrb[22].mxu1 }
 0xda9   : > { %v3339_v32 = vadd.f32 %v4181_v34, %v1525_v0  ;;  %3370 = vrot.lane.b32.xlu1 %v3365_v27, %s4855_s3  ;;  %v3327_v35 = vpop.f32.mrb[23].mxu1 }
 0xdaa   : > { %v3338_v7 = vadd.f32 %v3327_v35, %v1520_v1  ;;  %3368 = vrot.lane.b32.xlu0 %v3364_v4, %s4855_s3 }
 0xdab   : > { %v3367_v9 = vadd.f32 %v3362_v6, %v3339_v32 }
 0xdac   : > { %v3366_v12 = vadd.f32 %v3357_v10, %v3338_v7 }
 0xdad   : > { %3374 = vrot.lane.b32.xlu1 %v3367_v9, %s4855_s3 }
 0xdae   : > { %3372 = vrot.lane.b32.xlu0 %v3366_v12, %s4855_s3  ;;  %s3751_s3 = sshll.u32 %s5100_s0, 9 }
 0xdaf   : > { %s5621_s8 = scalar_lea.hbm %s5077_s21, %s3751_s3 }
 0xdb2   : > { %3384 = vperm.xlu0 %4573, %v3381_v36  }
 0xe1b   : > { %v3371_v37 = vpop.permute.xlu1 %3370 }
 0xe1c   : > { %3377 = vst.msk [vmem:[%s1264_s6 + $0x8] sm:$0xff] %vm1646_vm2, %v3371_v37  ;;  %v3369_v13 = vpop.permute.xlu0 %3368 }
 0xe1d   : > { %3376 = vst.msk [vmem:[%s1264_s6] sm:$0xff] %vm1646_vm2, %v3369_v13  ;;  %v4466_v15 = vpack.c.bf16 %v3371_v37, %v3369_v13 }
 0xe1f   : > { %4467 = vmatpush3.bf16.msra.mxu0 %v4466_v15  ;;  %v3375_v17 = vpop.permute.xlu1 %3374 }
 0xe20   : > { %3379 = vst.msk [vmem:[%s1264_s6 + $0x18] sm:$0xff] %vm1646_vm2, %v3375_v17  ;;  %v3373_v18 = vpop.permute.xlu0 %3372  ;;  %4468 = vmatprep.subr.bf16.mxu0 %v4852_v21 }
 0xe21   : > { %3378 = vst.msk [vmem:[%s1264_s6 + $0x10] sm:$0xff] %vm1646_vm2, %v3373_v18  ;;  %v4469_v31 = vpack.c.bf16 %v3375_v17, %v3373_v18 }
 0xe23   : > { %4470 = vmatpush3.bf16.msra.mxu0 %v4469_v31 }
 0xe26   : > { %4191 = vmatmul.mubr.msk.f32.vlgmr.msra.gmra.mrb[20].mxu0 %vm1430_vm1, %v3380_v19 }
 0xe27   : > { %4752 = shalt.err (!%p4749_p3)
}
 0xe28   : > { %s4753_s6 = scalar_lea.hbm %s5621_s8, 512  ;;  %s4757_s13 = scalar_lea.hbm %s5077_s21, 1024 }
 0xe29   : > { %p4754_p4 = scmp.ne.s32.totalorder %s5621_s8, %s4753_s6  ;;  %p4758_p9 = scmp.lt.u32.totalorder %s5621_s8, %s5077_s21 }
 0xe2a   : > { %p4759_p10 = scmp.lt.u32.totalorder %s4757_s13, %s4753_s6  ;;  %p4761_p12 = scmp.lt.u32.totalorder %s4753_s6, %s5621_s8 }
 0xe2b   : > { %p4755_p7 = pnand %p4754_p4, %p5117_p5 }
 0xe2c   : > { %p4760_p11 = por %p4759_p10, %p4758_p9 }
 0xe2d   : > { %p4756_p8 = pneg %p4755_p7 }
 0xe2e   : > { %p4762_p0 = por %p4761_p12, %p4760_p11 }
 0xe30   : > { %p4763_p13 = pnand %p4762_p0, %p4756_p8 }
 0xe32   : > { %4766 = shalt.err (!%p4763_p13)
}
 0xe33   : > { %s4857_s17 = smov 128   ;;  %s4858_s14 = smov 8   ;;  %v3385_v20 = vpop.permute.xlu0 %3384  ;;  %vm3460_vm0 = vcmask 780288  }
 0xe34   : > { %4479 = dma.vmem_to_hbm [thread:$0]  (%p5117_p5), %s5617_s5, 512, %s5621_s8, %s5623_s9, %s4857_s17, %s4857_s17, %s4858_s14  }
 0xe35   : > { %s3636_s9 = sshll.u32 %s5133_s11, 2 }
 0xe36   : > { %s1272_s8 = scalar_lea.vmem %s5072_s4, %s3636_s9 }
 0xef9   : > { %v3456_v22 = vpop.f32.mrb[20].mxu0 }
 0xefa   : > { %v3457_v23 = vadd.f32 %v3456_v22, %v3385_v20  ;;  %v4192_v44 = vpop.f32.mrb[21].mxu0 }
 0xefc   : > { %v3461_v25 = vsel %vm3460_vm0, %v3457_v23, -inf }
 0xefd   : > { %v3462_v14 = vrot.slane %v3461_v25, 4 }
 0xeff   : > { %v3463_v26 = vmax.f32 %v3461_v25, %v3462_v14 }
 0xf01   : > { %v3464_v38 = vrot.slane %v3463_v26, 2 }
 0xf03   : > { %v3465_v28 = vmax.f32 %v3463_v26, %v3464_v38 }
 0xf05   : > { %v3466_v41 = vrot.slane %v3465_v28, 1 }
 0xf07   : > { %v3467_v29 = vmax.f32 %v3465_v28, %v3466_v41 }
 0xf09   : > { %v3468_v30 = vsub.f32 %v3457_v23, %v3467_v29 }
 0xf0b   : > { %v3469_v53 = vmul.f32 1.442695, %v3468_v30 }
 0xf0d   : > { %4735 = vpow2.f32 %v3469_v53 }
 0xf17   : > { %v4736_v33 = vpop.eup %4735 }
 0xf18   : > { %v3471_v24 = vsel %vm3460_vm0, %v4736_v33, 0.0 }
 0xf19   : > { %v3472_v2 = vrot.slane %v3471_v24, 4 }
 0xf1b   : > { %v3473_v3 = vadd.f32 %v3472_v2, %v3471_v24 }
 0xf1d   : > { %v3474_v39 = vrot.slane %v3473_v3, 2 }
 0xf1f   : > { %v3475_v40 = vadd.f32 %v3474_v39, %v3473_v3 }
 0xf21   : > { %v3476_v43 = vrot.slane %v3475_v40, 1 }
 0xf23   : > { %v3477_v45 = vadd.f32 %v3476_v43, %v3475_v40 }
 0xf25   : > { %4737 = vrcp.f32 %v3477_v45 }
 0xf2f   : > { %v4738_v46 = vpop.eup %4737 }
 0xf30   : > { %v3479_v47 = vmul.f32 %v4738_v46, %v4736_v33 }
 0xf32   : > { %3480 = vst.msk [vmem:[%s1272_s8] sm:$0x7] %vm3460_vm0, %v3479_v47 }
 0xf33 PF: > { %p4485_p5 = scmp.ge.s32.totalorder %s4801_s22, 2  ;;  %s3524_s12 = sand.u32 1, %s4789_s15  }
 0xf34   : > { %s3525_s0 = scalar_lea.sflag [#allocation3], %s3524_s12 }
 0xf35   : > { %p4482_p1 = pnand %p4485_p5, %p5121_p6 }
 0xf37   : > { %4784 = dma.done.wait (!%p4482_p1), %s3525_s0, 512  }
 0xf38   : > { %4786 = vsyncadd (!%p4482_p1), %s3525_s0, 4294966784  ;;  %p96_p2 = scmp.ge.s32.totalorder %s5104_s26, 4   ;;  %s5822_s15 = smov %s4793_s16 }
 0xf39   : > { %s5823_s16 = smov %s4797_s18  ;;  %s5824_s18 = smov %s5115_s2 }
 0xf3a   : > { %s5825_s22 = smov %s5104_s26  ;;  %98 = sbr.rel (!%p96_p2) target bundleno = 91 (0x5b), region = 273 }
 0xf41   :  { %3530 = vsyncpa [#allocation3], 1 }
 0xf42   :  { %3532 = vsyncpa [#allocation3 + $0x1], 1 }

</bundles_post_ra>
